<compile_context>
chip_gen: v7x
topology: tpu7x:2x2x1
jax: 0.10.0
libtpu: 0.0.40
codegen_flags: <defaults>
</compile_context>

<pallas_src>
import math

import jax
import jax.numpy as jnp
from jax.experimental import pallas as pl
from jax.experimental.pallas import tpu as pltpu

LN_EPS = 1e-5        # layer_norm_eps in CM2WordEmbedding
POOL_EPS = 1e-12     # eps in _avg_embedding_by_mask

# MXU operand dtype: bf16 operands + f32 accumulation.
MXU_DTYPE = jnp.bfloat16
# HBM dtype of the gathered (rows, S, V) token tensor (halves HBM traffic).
TOK_DTYPE = jnp.bfloat16

_BUDGET_CACHE = None


def _vmem_budgets():
    """Generation-aware (vmem_limit_bytes, per-kernel tile VMEM budget)."""
    global _BUDGET_CACHE
    if _BUDGET_CACHE is None:
        try:
            cap = int(getattr(pltpu.get_tpu_info(), "vmem_capacity_bytes",
                              64 * 1024 * 1024))
        except Exception:
            cap = 64 * 1024 * 1024                     # conservative fallback
        if cap <= 64 * 1024 * 1024:                    # v7x: 64 MiB per TensorCore
            _BUDGET_CACHE = (44 * 1024 * 1024, 18 * 1024 * 1024)
        else:                                          # v5e / v6e: 128 MiB
            _BUDGET_CACHE = (96 * 1024 * 1024, 64 * 1024 * 1024)
    return _BUDGET_CACHE


def _pick_tile(n, per_item_bytes, budget, cap=512):
    """Pick a tile size along the tiled axis and the padded axis length.

    If n fits in one tile the full axis is a single block (always layout-legal);
    otherwise the tile is a multiple of 8 and n is padded up to a multiple of it.
    """
    t = max(8, min(cap, budget // max(per_item_bytes, 1)))
    t = max(8, (t // 8) * 8)
    if n <= t:
        return n, n
    n_pad = ((n + t - 1) // t) * t
    return t, n_pad


# --------------------------------------------------------------------------
# Kernel 1: fused LayerNorm(V) + masked average pool over seq + align matmul.
#   tok:  (TR, S, V) bf16 (masked tokens pre-zeroed)   mask: (TR, S) f32
#   ln_w/ln_b: (1, V) f32   W: (V, H) bf16  ->  out: (TR, H) f32
# --------------------------------------------------------------------------
def _ln_pool_align_kernel(tok_ref, mask_ref, lnw_ref, lnb_ref, w_ref, out_ref):
    x = tok_ref[...].astype(jnp.float32)                    # upcast once; f32 VPU math
    v = x.shape[-1]
    # single-pass mean / variance (independent lane reduces, no (x - mu) temp)
    s1 = jnp.sum(x, axis=-1, keepdims=True)
    s2 = jnp.sum(x * x, axis=-1, keepdims=True)
    mu = s1 * (1.0 / v)
    var = jnp.maximum(s2 * (1.0 / v) - mu * mu, 0.0)        # clamp against cancellation
    xhat = (x - mu) * jax.lax.rsqrt(var + LN_EPS)           # NO per-token affine

    # Masked tokens are exactly zero -> xhat == 0 -> they drop out of the sum,
    # so the LN affine is applied once to the pooled vector:
    #   pooled = (ln_w * sum_s(xhat) + cnt * ln_b) / (cnt + eps)
    ssum = jnp.sum(xhat, axis=1)                            # (TR, V)
    cnt = jnp.sum(mask_ref[...], axis=-1, keepdims=True)    # (TR, 1)
    inv = 1.0 / (cnt + POOL_EPS)
    pooled = (lnw_ref[...] * ssum + cnt * lnb_ref[...]) * inv

    out_ref[...] = jnp.dot(pooled.astype(MXU_DTYPE), w_ref[...],
                           preferred_element_type=jnp.float32)   # align_layer


def gather_ln_pool_align(emb_table, ids, att_mask, ln_w, ln_b, w_mxu):
    """align_layer(_avg_embedding_by_mask(LayerNorm(emb_table[ids]), att_mask)).

    Embedding gather + mask-zeroing + bf16 downcast happen in the XLA producer
    fusion; LN, masked average pooling and the align matmul run fused in one
    row-tiled Pallas kernel.  Returns (rows, H) float32.
    """
    R, S = ids.shape
    V = emb_table.shape[1]
    H = w_mxu.shape[1]
    vmem_limit, tile_budget = _vmem_budgets()

    # Row tile: double-buffered bf16 token block + ~2 f32 LN temporaries per row.
    per_row = S * V * (2 * 2 + 2 * 4)
    TR, R_pad = _pick_tile(R, per_row, tile_budget)
    if R_pad != R:
        ids = jnp.pad(ids, ((0, R_pad - R), (0, 0)))
        att_mask = jnp.pad(att_mask, ((0, R_pad - R), (0, 0)))
    maskf = att_mask.astype(jnp.float32)                    # (R_pad, S)

    # TODO(synk): fuse this gather into the kernel (scalar-prefetched ids +
    # manual HBM->VMEM row DMAs with memory_space=pl.ANY on the table) so the
    # (rows, S, V) token tensor never round-trips through HBM.
    tok = jnp.take(emb_table, ids, axis=0).astype(TOK_DTYPE)
    tok = jnp.where(att_mask[:, :, None] != 0, tok, jnp.zeros((), TOK_DTYPE))

    out = pl.pallas_call(
        _ln_pool_align_kernel,
        out_shape=jax.ShapeDtypeStruct((R_pad, H), jnp.float32),
        grid=(R_pad // TR,),
        in_specs=[
            pl.BlockSpec((TR, S, V), lambda i: (i, 0, 0)),
            pl.BlockSpec((TR, S), lambda i: (i, 0)),
            pl.BlockSpec((1, V), lambda i: (0, 0)),      # resident LN weight
            pl.BlockSpec((1, V), lambda i: (0, 0)),      # resident LN bias
            pl.BlockSpec((V, H), lambda i: (0, 0)),      # resident align weight (bf16)
        ],
        out_specs=pl.BlockSpec((TR, H), lambda i: (i, 0)),
        compiler_params=pltpu.CompilerParams(
            dimension_semantics=("parallel",),
            vmem_limit_bytes=vmem_limit),
    )(tok, maskf, ln_w, ln_b, w_mxu)
    return out[:R] if R_pad != R else out


def pooled_aligned_multi(emb_table, ln_w, ln_b, w_mxu, ids_mask_list):
    """Run gather_ln_pool_align once per distinct sequence length, concatenating
    all row groups that share it (merges the tiny per-group calls)."""
    results = [None] * len(ids_mask_list)
    buckets = {}
    for idx, (ids, _) in enumerate(ids_mask_list):
        buckets.setdefault(int(ids.shape[1]), []).append(idx)
    for _, idxs in buckets.items():
        ids_cat = jnp.concatenate([ids_mask_list[i][0] for i in idxs], axis=0)
        mask_cat = jnp.concatenate([ids_mask_list[i][1] for i in idxs], axis=0)
        out = gather_ln_pool_align(emb_table, ids_cat, mask_cat, ln_w, ln_b, w_mxu)
        off = 0
        for i in idxs:
            n = ids_mask_list[i][0].shape[0]
            results[i] = out[off:off + n]
            off += n
    return results


# --------------------------------------------------------------------------
# Kernel 2: per-sample feature embeddings from the ALIGNED column embeddings.
#   Linearity of the bias-free align layer:
#     num_feat = x_num * align(num_col) + align(num_bias)
#     cat_feat = 0.5 * (align(cat_col) + align(x_cat_value))
#   Writes the final (TB, Fn+Fc, H) block directly (no XLA concatenate after).
# --------------------------------------------------------------------------
def _combine_kernel(numcol_ref, xnum_ref, biash_ref, catcol_ref, xcat_ref, out_ref):
    fn = numcol_ref.shape[0]
    num_feat = (numcol_ref[...][None, :, :] * xnum_ref[...][:, :, None]
                + biash_ref[...][None, :, :])                       # (TB, Fn, H)
    cat_feat = 0.5 * (catcol_ref[...][None, :, :] + xcat_ref[...])  # (TB, Fc, H)
    out_ref[:, :fn, :] = num_feat
    out_ref[:, fn:, :] = cat_feat


def combine_features(num_col_h, x_num, bias_h, cat_col_h, x_cat_h):
    B, Fn = x_num.shape
    Fc, H = cat_col_h.shape
    F = Fn + Fc
    vmem_limit, tile_budget = _vmem_budgets()

    per_batch = 4 * H * (2 * F + 2 * Fc + 2) + 8 * Fn   # rough VMEM per batch row
    TB, B_pad = _pick_tile(B, per_batch, tile_budget)

    xnum = x_num.astype(jnp.float32)                    # (B, Fn), lane-dense 2-D block
    xcat = x_cat_h
    if B_pad != B:
        xnum = jnp.pad(xnum, ((0, B_pad - B), (0, 0)))
        xcat = jnp.pad(xcat, ((0, B_pad - B), (0, 0), (0, 0)))

    out = pl.pallas_call(
        _combine_kernel,
        out_shape=jax.ShapeDtypeStruct((B_pad, F, H), jnp.float32),
        grid=(B_pad // TB,),
        in_specs=[
            pl.BlockSpec((Fn, H), lambda i: (0, 0)),         # resident
            pl.BlockSpec((TB, Fn), lambda i: (i, 0)),
            pl.BlockSpec((1, H), lambda i: (0, 0)),          # resident
            pl.BlockSpec((Fc, H), lambda i: (0, 0)),         # resident
            pl.BlockSpec((TB, Fc, H), lambda i: (i, 0, 0)),
        ],
        out_specs=pl.BlockSpec((TB, F, H), lambda i: (i, 0, 0)),
        compiler_params=pltpu.CompilerParams(
            dimension_semantics=("parallel",),
            vmem_limit_bytes=vmem_limit),
    )(num_col_h, xnum, bias_h, cat_col_h, xcat)
    return out[:B] if B_pad != B else out


# --------------------------------------------------------------------------
# CM2FeatureProcessor.forward (pool_policy='avg')
# --------------------------------------------------------------------------
def cm2_feature_processor_forward(params,
                                  x_num, num_col_input_ids, num_att_mask,
                                  x_cat_input_ids, x_cat_att_mask,
                                  col_cat_input_ids, col_cat_att_mask):
    w_mxu = params['align_w'].astype(MXU_DTYPE)              # (V, H) bf16 MXU operand
    H = params['align_w'].shape[1]

    B, Fc, S = x_cat_input_ids.shape
    flat_ids = x_cat_input_ids.reshape(B * Fc, S)
    flat_mask = x_cat_att_mask.reshape(B * Fc, S)

    # ONE merged header-path call: num column names, cat column names, and the
    # per-cell "bert" header embedding (instead of three tiny pallas_calls).
    num_col_h, cat_col_h, cat_bert_flat = pooled_aligned_multi(
        params['emb_header'], params['ln_header_w'], params['ln_header_b'], w_mxu,
        [(num_col_input_ids, num_att_mask),
         (col_cat_input_ids, col_cat_att_mask),
         (flat_ids, flat_mask)])
    cat_bert_h = cat_bert_flat.reshape(B, Fc, H)

    # Value-path embedding of the cell tokens.
    (x_cat_flat,) = pooled_aligned_multi(
        params['emb_value'], params['ln_value_w'], params['ln_value_b'], w_mxu,
        [(flat_ids, flat_mask)])
    x_cat_h = x_cat_flat.reshape(B, Fc, H)

    # align(num_bias): a single (1, V) @ (V, H) — plain dot, no grid=(1,) kernel.
    bias_h = jnp.dot(params['num_bias'], params['align_w'])              # (1, H)

    # Per-sample embeddings via linearity of the bias-free align layer; the
    # kernel writes the final (B, Fn+Fc, H) tensor directly.
    all_feat_embedding = combine_features(num_col_h, x_num, bias_h, cat_col_h, x_cat_h)

    attention_mask = jnp.ones(all_feat_embedding.shape[:2], jnp.float32)  # (B, Fn+Fc)
    col_emb = jnp.concatenate([num_col_h, cat_col_h], axis=0)             # (Fn+Fc, H)

    other_info = {
        'col_emb': col_emb,
        'num_cnt': num_col_h.shape[0],
        'x_num': x_num,
        'cat_bert_emb': cat_bert_h,
    }
    return {'embedding': all_feat_embedding, 'attention_mask': attention_mask}, other_info


# --------------------------------------------------------------------------
# Deterministic parameter construction (stand-in for checkpoint loads).
# --------------------------------------------------------------------------
def make_params(key, vocab_size, vocab_dim, hidden_dim):
    ks = jax.random.split(key, 8)
    inv = 1.0 / math.sqrt(vocab_dim)
    return {
        # word_embeddings_header: stand-in for ./CM2/bert_emb.pt
        'emb_header': 0.02 * jax.random.normal(ks[0], (vocab_size, vocab_dim), jnp.float32),
        # word_embeddings_value: kaiming_normal_ (fan_in = vocab_dim)
        'emb_value': math.sqrt(2.0 / vocab_dim)
                     * jax.random.normal(ks[1], (vocab_size, vocab_dim), jnp.float32),
        # norm_header: stand-in for bert_layernorm_{weight,bias}.pt
        'ln_header_w': (1.0 + 0.1 * jax.random.normal(ks[2], (1, vocab_dim), jnp.float32)),
        'ln_header_b': 0.1 * jax.random.normal(ks[3], (1, vocab_dim), jnp.float32),
        # norm_value: default LayerNorm init
        'ln_value_w': jnp.ones((1, vocab_dim), jnp.float32),
        'ln_value_b': jnp.zeros((1, vocab_dim), jnp.float32),
        # CM2NumEmbedding.num_bias ~ U(-1/sqrt(V), 1/sqrt(V))   (torch shape (1,1,V))
        'num_bias': jax.random.uniform(ks[4], (1, vocab_dim), jnp.float32, -inv, inv),
        # align_layer: Linear(vocab_dim, hidden_dim, bias=False), stored transposed (V, H)
        'align_w': jax.random.uniform(ks[5], (vocab_dim, hidden_dim), jnp.float32, -inv, inv),
    }


if __name__ == "__main__":
    key = jax.random.PRNGKey(0)
    k_par, k_xnum, k_nid, k_nm, k_cid, k_cm, k_ccid, k_ccm = jax.random.split(key, 8)

    # small test shapes
    B, Fn, Fc, S = 2, 3, 4, 8          # batch, num cols, cat cols, tokens per field
    vocab_size, V, H = 50, 256, 128    # vocab, vocab_dim, hidden_dim

    params = make_params(k_par, vocab_size, V, H)

    x_num = jax.random.normal(k_xnum, (B, Fn), jnp.float32)
    num_col_input_ids = jax.random.randint(k_nid, (Fn, S), 1, vocab_size, jnp.int32)
    num_att_mask = jax.random.bernoulli(k_nm, 0.8, (Fn, S)).astype(jnp.int32)
    num_att_mask = num_att_mask.at[:, 0].set(1)

    x_cat_input_ids = jax.random.randint(k_cid, (B, Fc, S), 1, vocab_size, jnp.int32)
    x_cat_att_mask = jax.random.bernoulli(k_cm, 0.8, (B, Fc, S)).astype(jnp.int32)
    x_cat_att_mask = x_cat_att_mask.at[:, :, 0].set(1)

    col_cat_input_ids = jax.random.randint(k_ccid, (Fc, S), 1, vocab_size, jnp.int32)
    col_cat_att_mask = jax.random.bernoulli(k_ccm, 0.8, (Fc, S)).astype(jnp.int32)
    col_cat_att_mask = col_cat_att_mask.at[:, 0].set(1)

    fwd = jax.jit(cm2_feature_processor_forward)
    out, other_info = fwd(params, x_num, num_col_input_ids, num_att_mask,
                          x_cat_input_ids, x_cat_att_mask,
                          col_cat_input_ids, col_cat_att_mask)

    emb = jax.block_until_ready(out['embedding'])
    jax.block_until_ready(out['attention_mask'])
    jax.block_until_ready(other_info['col_emb'])
    jax.block_until_ready(other_info['cat_bert_emb'])

    assert emb.shape == (B, Fn + Fc, H)
    assert out['attention_mask'].shape == (B, Fn + Fc)
    assert other_info['col_emb'].shape == (Fn + Fc, H)
    assert other_info['cat_bert_emb'].shape == (B, Fc, H)
    assert other_info['num_cnt'] == Fn
    assert bool(jnp.all(jnp.isfinite(emb)))

    print("KERNEL_OK")
</pallas_src>

<mosaic_0001>
module attributes {stable_mosaic.version = 11 : i64} {
  func.func @_ln_pool_align_kernel(%arg0: i32, %arg1: memref<15x8x256xbf16, #tpu.memory_space<vmem>>, %arg2: memref<15x8xf32, #tpu.memory_space<vmem>>, %arg3: memref<1x256xf32, #tpu.memory_space<vmem>>, %arg4: memref<1x256xf32, #tpu.memory_space<vmem>>, %arg5: memref<256x128xbf16, #tpu.memory_space<vmem>>, %arg6: memref<15x128xf32, #tpu.memory_space<vmem>>) attributes {dimension_semantics = [#tpu.dimension_semantics<parallel>], iteration_bounds = array<i64: 1>, scalar_prefetch = 0 : i64, scratch_operands = 0 : i64, tpu.core_type = #tpu.core_type<tc>, window_params = [{transform_indices = @transform_0, window_bounds = array<i64: 15, 8, 256>}, {transform_indices = @transform_1, window_bounds = array<i64: 15, 8>}, {pipeline_mode = #tpu.pipeline_mode<synchronous>, transform_indices = @transform_2, window_bounds = array<i64: 1, 256>}, {pipeline_mode = #tpu.pipeline_mode<synchronous>, transform_indices = @transform_3, window_bounds = array<i64: 1, 256>}, {pipeline_mode = #tpu.pipeline_mode<synchronous>, transform_indices = @transform_4, window_bounds = array<i64: 256, 128>}, {transform_indices = @transform_5, window_bounds = array<i64: 15, 128>}]} {
    %c0 = arith.constant 0 : index
    %c0_0 = arith.constant 0 : index
    %c0_1 = arith.constant 0 : index
    %0 = vector.load %arg1[%c0, %c0_0, %c0_1] : memref<15x8x256xbf16, #tpu.memory_space<vmem>>, vector<15x8x256xbf16>
    %1 = arith.extf %0 : vector<15x8x256xbf16> to vector<15x8x256xf32>
    %cst = arith.constant dense<0.000000e+00> : vector<15x8xf32>
    %2 = vector.multi_reduction <add>, %1, %cst [2] : vector<15x8x256xf32> to vector<15x8xf32>
    %3 = vector.shape_cast %2 : vector<15x8xf32> to vector<15x8x1xf32>
    %4 = arith.mulf %1, %1 : vector<15x8x256xf32>
    %cst_2 = arith.constant dense<0.000000e+00> : vector<15x8xf32>
    %5 = vector.multi_reduction <add>, %4, %cst_2 [2] : vector<15x8x256xf32> to vector<15x8xf32>
    %6 = vector.shape_cast %5 : vector<15x8xf32> to vector<15x8x1xf32>
    %cst_3 = arith.constant 3.906250e-03 : f32
    %7 = vector.broadcast %cst_3 : f32 to vector<15x8x1xf32>
    %8 = arith.mulf %3, %7 : vector<15x8x1xf32>
    %cst_4 = arith.constant 3.906250e-03 : f32
    %9 = vector.broadcast %cst_4 : f32 to vector<15x8x1xf32>
    %10 = arith.mulf %6, %9 : vector<15x8x1xf32>
    %11 = arith.mulf %8, %8 : vector<15x8x1xf32>
    %12 = arith.subf %10, %11 : vector<15x8x1xf32>
    %cst_5 = arith.constant 0.000000e+00 : f32
    %13 = vector.broadcast %cst_5 : f32 to vector<15x8x1xf32>
    %14 = arith.maximumf %12, %13 : vector<15x8x1xf32>
    %15 = vector.broadcast %8 : vector<15x8x1xf32> to vector<15x8x256xf32>
    %16 = arith.subf %1, %15 : vector<15x8x256xf32>
    %cst_6 = arith.constant 9.99999974E-6 : f32
    %17 = vector.broadcast %cst_6 : f32 to vector<15x8x1xf32>
    %18 = arith.addf %14, %17 : vector<15x8x1xf32>
    %19 = math.rsqrt %18 : vector<15x8x1xf32>
    %20 = vector.broadcast %19 : vector<15x8x1xf32> to vector<15x8x256xf32>
    %21 = arith.mulf %16, %20 : vector<15x8x256xf32>
    %cst_7 = arith.constant dense<0.000000e+00> : vector<15x256xf32>
    %22 = vector.multi_reduction <add>, %21, %cst_7 [1] : vector<15x8x256xf32> to vector<15x256xf32>
    %c0_8 = arith.constant 0 : index
    %c0_9 = arith.constant 0 : index
    %23 = vector.load %arg2[%c0_8, %c0_9] : memref<15x8xf32, #tpu.memory_space<vmem>>, vector<15x8xf32>
    %cst_10 = arith.constant dense<0.000000e+00> : vector<15xf32>
    %24 = vector.multi_reduction <add>, %23, %cst_10 [1] : vector<15x8xf32> to vector<15xf32>
    %25 = vector.shape_cast %24 : vector<15xf32> to vector<15x1xf32>
    %cst_11 = arith.constant 9.99999996E-13 : f32
    %26 = vector.broadcast %cst_11 : f32 to vector<15x1xf32>
    %27 = arith.addf %25, %26 : vector<15x1xf32>
    %cst_12 = arith.constant 1.000000e+00 : f32
    %28 = vector.broadcast %cst_12 : f32 to vector<15x1xf32>
    %29 = arith.divf %28, %27 : vector<15x1xf32>
    %c0_13 = arith.constant 0 : index
    %c0_14 = arith.constant 0 : index
    %30 = vector.load %arg3[%c0_13, %c0_14] : memref<1x256xf32, #tpu.memory_space<vmem>>, vector<1x256xf32>
    %31 = vector.broadcast %30 : vector<1x256xf32> to vector<15x256xf32>
    %32 = arith.mulf %31, %22 : vector<15x256xf32>
    %c0_15 = arith.constant 0 : index
    %c0_16 = arith.constant 0 : index
    %33 = vector.load %arg4[%c0_15, %c0_16] : memref<1x256xf32, #tpu.memory_space<vmem>>, vector<1x256xf32>
    %34 = vector.broadcast %25 : vector<15x1xf32> to vector<15x256xf32>
    %35 = vector.broadcast %33 : vector<1x256xf32> to vector<15x256xf32>
    %36 = arith.mulf %34, %35 : vector<15x256xf32>
    %37 = arith.addf %32, %36 : vector<15x256xf32>
    %38 = vector.broadcast %29 : vector<15x1xf32> to vector<15x256xf32>
    %39 = arith.mulf %37, %38 : vector<15x256xf32>
    %40 = arith.truncf %39 : vector<15x256xf32> to vector<15x256xbf16>
    %c0_17 = arith.constant 0 : index
    %c0_18 = arith.constant 0 : index
    %41 = vector.load %arg5[%c0_17, %c0_18] : memref<256x128xbf16, #tpu.memory_space<vmem>>, vector<256x128xbf16>
    %cst_19 = arith.constant dense<0.000000e+00> : vector<15x128xf32>
    %42 = tpu.matmul %40, %41, %cst_19 {dimension_numbers = #tpu.dot_dimension_numbers<[1], [0], [0], [1], [0, 0, 1, 1], [], []>} : vector<15x256xbf16>, vector<256x128xbf16>, vector<15x128xf32> -> vector<15x128xf32>
    %c0_20 = arith.constant 0 : index
    %c0_21 = arith.constant 0 : index
    %43 = vector.load %arg6[%c0_20, %c0_21] : memref<15x128xf32, #tpu.memory_space<vmem>>, vector<15x128xf32>
    tpu.vector_store %arg6[%c0_20, %c0_21], %42 {strides = array<i32>} : memref<15x128xf32, #tpu.memory_space<vmem>>, vector<15x128xf32>,
    return
  }
  func.func @transform_0(%arg0: i32) -> (i32, i32, i32) {
    %c0_i32 = arith.constant 0 : i32
    %c0_i32_0 = arith.constant 0 : i32
    %c0_i32_1 = arith.constant 0 : i32
    return %arg0, %c0_i32, %c0_i32_0 : i32, i32, i32
  }
  func.func @transform_1(%arg0: i32) -> (i32, i32) {
    %c0_i32 = arith.constant 0 : i32
    %c0_i32_0 = arith.constant 0 : i32
    return %arg0, %c0_i32 : i32, i32
  }
  func.func @transform_2(%arg0: i32) -> (i32, i32) {
    %c0_i32 = arith.constant 0 : i32
    %c0_i32_0 = arith.constant 0 : i32
    %c0_i32_1 = arith.constant 0 : i32
    return %c0_i32, %c0_i32_0 : i32, i32
  }
  func.func @transform_3(%arg0: i32) -> (i32, i32) {
    %c0_i32 = arith.constant 0 : i32
    %c0_i32_0 = arith.constant 0 : i32
    %c0_i32_1 = arith.constant 0 : i32
    return %c0_i32, %c0_i32_0 : i32, i32
  }
  func.func @transform_4(%arg0: i32) -> (i32, i32) {
    %c0_i32 = arith.constant 0 : i32
    %c0_i32_0 = arith.constant 0 : i32
    %c0_i32_1 = arith.constant 0 : i32
    return %c0_i32, %c0_i32_0 : i32, i32
  }
  func.func @transform_5(%arg0: i32) -> (i32, i32) {
    %c0_i32 = arith.constant 0 : i32
    %c0_i32_0 = arith.constant 0 : i32
    return %arg0, %c0_i32 : i32, i32
  }
}

module attributes {stable_mosaic.version = 11 : i64} {
  func.func @_ln_pool_align_kernel(%arg0: i32, %arg1: memref<8x8x256xbf16, #tpu.memory_space<vmem>>, %arg2: memref<8x8xf32, #tpu.memory_space<vmem>>, %arg3: memref<1x256xf32, #tpu.memory_space<vmem>>, %arg4: memref<1x256xf32, #tpu.memory_space<vmem>>, %arg5: memref<256x128xbf16, #tpu.memory_space<vmem>>, %arg6: memref<8x128xf32, #tpu.memory_space<vmem>>) attributes {dimension_semantics = [#tpu.dimension_semantics<parallel>], iteration_bounds = array<i64: 1>, scalar_prefetch = 0 : i64, scratch_operands = 0 : i64, tpu.core_type = #tpu.core_type<tc>, window_params = [{transform_indices = @transform_0, window_bounds = array<i64: 8, 8, 256>}, {transform_indices = @transform_1, window_bounds = array<i64: 8, 8>}, {pipeline_mode = #tpu.pipeline_mode<synchronous>, transform_indices = @transform_2, window_bounds = array<i64: 1, 256>}, {pipeline_mode = #tpu.pipeline_mode<synchronous>, transform_indices = @transform_3, window_bounds = array<i64: 1, 256>}, {pipeline_mode = #tpu.pipeline_mode<synchronous>, transform_indices = @transform_4, window_bounds = array<i64: 256, 128>}, {transform_indices = @transform_5, window_bounds = array<i64: 8, 128>}]} {
    %c0 = arith.constant 0 : index
    %c0_0 = arith.constant 0 : index
    %c0_1 = arith.constant 0 : index
    %0 = vector.load %arg1[%c0, %c0_0, %c0_1] : memref<8x8x256xbf16, #tpu.memory_space<vmem>>, vector<8x8x256xbf16>
    %1 = arith.extf %0 : vector<8x8x256xbf16> to vector<8x8x256xf32>
    %cst = arith.constant dense<0.000000e+00> : vector<8x8xf32>
    %2 = vector.multi_reduction <add>, %1, %cst [2] : vector<8x8x256xf32> to vector<8x8xf32>
    %3 = vector.shape_cast %2 : vector<8x8xf32> to vector<8x8x1xf32>
    %4 = arith.mulf %1, %1 : vector<8x8x256xf32>
    %cst_2 = arith.constant dense<0.000000e+00> : vector<8x8xf32>
    %5 = vector.multi_reduction <add>, %4, %cst_2 [2] : vector<8x8x256xf32> to vector<8x8xf32>
    %6 = vector.shape_cast %5 : vector<8x8xf32> to vector<8x8x1xf32>
    %cst_3 = arith.constant 3.906250e-03 : f32
    %7 = vector.broadcast %cst_3 : f32 to vector<8x8x1xf32>
    %8 = arith.mulf %3, %7 : vector<8x8x1xf32>
    %cst_4 = arith.constant 3.906250e-03 : f32
    %9 = vector.broadcast %cst_4 : f32 to vector<8x8x1xf32>
    %10 = arith.mulf %6, %9 : vector<8x8x1xf32>
    %11 = arith.mulf %8, %8 : vector<8x8x1xf32>
    %12 = arith.subf %10, %11 : vector<8x8x1xf32>
    %cst_5 = arith.constant 0.000000e+00 : f32
    %13 = vector.broadcast %cst_5 : f32 to vector<8x8x1xf32>
    %14 = arith.maximumf %12, %13 : vector<8x8x1xf32>
    %15 = vector.broadcast %8 : vector<8x8x1xf32> to vector<8x8x256xf32>
    %16 = arith.subf %1, %15 : vector<8x8x256xf32>
    %cst_6 = arith.constant 9.99999974E-6 : f32
    %17 = vector.broadcast %cst_6 : f32 to vector<8x8x1xf32>
    %18 = arith.addf %14, %17 : vector<8x8x1xf32>
    %19 = math.rsqrt %18 : vector<8x8x1xf32>
    %20 = vector.broadcast %19 : vector<8x8x1xf32> to vector<8x8x256xf32>
    %21 = arith.mulf %16, %20 : vector<8x8x256xf32>
    %cst_7 = arith.constant dense<0.000000e+00> : vector<8x256xf32>
    %22 = vector.multi_reduction <add>, %21, %cst_7 [1] : vector<8x8x256xf32> to vector<8x256xf32>
    %c0_8 = arith.constant 0 : index
    %c0_9 = arith.constant 0 : index
    %23 = vector.load %arg2[%c0_8, %c0_9] : memref<8x8xf32, #tpu.memory_space<vmem>>, vector<8x8xf32>
    %cst_10 = arith.constant dense<0.000000e+00> : vector<8xf32>
    %24 = vector.multi_reduction <add>, %23, %cst_10 [1] : vector<8x8xf32> to vector<8xf32>
    %25 = vector.shape_cast %24 : vector<8xf32> to vector<8x1xf32>
    %cst_11 = arith.constant 9.99999996E-13 : f32
    %26 = vector.broadcast %cst_11 : f32 to vector<8x1xf32>
    %27 = arith.addf %25, %26 : vector<8x1xf32>
    %cst_12 = arith.constant 1.000000e+00 : f32
    %28 = vector.broadcast %cst_12 : f32 to vector<8x1xf32>
    %29 = arith.divf %28, %27 : vector<8x1xf32>
    %c0_13 = arith.constant 0 : index
    %c0_14 = arith.constant 0 : index
    %30 = vector.load %arg3[%c0_13, %c0_14] : memref<1x256xf32, #tpu.memory_space<vmem>>, vector<1x256xf32>
    %31 = vector.broadcast %30 : vector<1x256xf32> to vector<8x256xf32>
    %32 = arith.mulf %31, %22 : vector<8x256xf32>
    %c0_15 = arith.constant 0 : index
    %c0_16 = arith.constant 0 : index
    %33 = vector.load %arg4[%c0_15, %c0_16] : memref<1x256xf32, #tpu.memory_space<vmem>>, vector<1x256xf32>
    %34 = vector.broadcast %25 : vector<8x1xf32> to vector<8x256xf32>
    %35 = vector.broadcast %33 : vector<1x256xf32> to vector<8x256xf32>
    %36 = arith.mulf %34, %35 : vector<8x256xf32>
    %37 = arith.addf %32, %36 : vector<8x256xf32>
    %38 = vector.broadcast %29 : vector<8x1xf32> to vector<8x256xf32>
    %39 = arith.mulf %37, %38 : vector<8x256xf32>
    %40 = arith.truncf %39 : vector<8x256xf32> to vector<8x256xbf16>
    %c0_17 = arith.constant 0 : index
    %c0_18 = arith.constant 0 : index
    %41 = vector.load %arg5[%c0_17, %c0_18] : memref<256x128xbf16, #tpu.memory_space<vmem>>, vector<256x128xbf16>
    %cst_19 = arith.constant dense<0.000000e+00> : vector<8x128xf32>
    %42 = tpu.matmul %40, %41, %cst_19 {dimension_numbers = #tpu.dot_dimension_numbers<[1], [0], [0], [1], [0, 0, 1, 1], [], []>} : vector<8x256xbf16>, vector<256x128xbf16>, vector<8x128xf32> -> vector<8x128xf32>
    %c0_20 = arith.constant 0 : index
    %c0_21 = arith.constant 0 : index
    %43 = vector.load %arg6[%c0_20, %c0_21] : memref<8x128xf32, #tpu.memory_space<vmem>>, vector<8x128xf32>
    tpu.vector_store %arg6[%c0_20, %c0_21], %42 {strides = array<i32>} : memref<8x128xf32, #tpu.memory_space<vmem>>, vector<8x128xf32>,
    return
  }
  func.func @transform_0(%arg0: i32) -> (i32, i32, i32) {
    %c0_i32 = arith.constant 0 : i32
    %c0_i32_0 = arith.constant 0 : i32
    %c0_i32_1 = arith.constant 0 : i32
    return %arg0, %c0_i32, %c0_i32_0 : i32, i32, i32
  }
  func.func @transform_1(%arg0: i32) -> (i32, i32) {
    %c0_i32 = arith.constant 0 : i32
    %c0_i32_0 = arith.constant 0 : i32
    return %arg0, %c0_i32 : i32, i32
  }
  func.func @transform_2(%arg0: i32) -> (i32, i32) {
    %c0_i32 = arith.constant 0 : i32
    %c0_i32_0 = arith.constant 0 : i32
    %c0_i32_1 = arith.constant 0 : i32
    return %c0_i32, %c0_i32_0 : i32, i32
  }
  func.func @transform_3(%arg0: i32) -> (i32, i32) {
    %c0_i32 = arith.constant 0 : i32
    %c0_i32_0 = arith.constant 0 : i32
    %c0_i32_1 = arith.constant 0 : i32
    return %c0_i32, %c0_i32_0 : i32, i32
  }
  func.func @transform_4(%arg0: i32) -> (i32, i32) {
    %c0_i32 = arith.constant 0 : i32
    %c0_i32_0 = arith.constant 0 : i32
    %c0_i32_1 = arith.constant 0 : i32
    return %c0_i32, %c0_i32_0 : i32, i32
  }
  func.func @transform_5(%arg0: i32) -> (i32, i32) {
    %c0_i32 = arith.constant 0 : i32
    %c0_i32_0 = arith.constant 0 : i32
    return %arg0, %c0_i32 : i32, i32
  }
}

module attributes {stable_mosaic.version = 11 : i64} {
  func.func @_combine_kernel(%arg0: i32, %arg1: memref<3x128xf32, #tpu.memory_space<vmem>>, %arg2: memref<2x3xf32, #tpu.memory_space<vmem>>, %arg3: memref<1x128xf32, #tpu.memory_space<vmem>>, %arg4: memref<4x128xf32, #tpu.memory_space<vmem>>, %arg5: memref<2x4x128xf32, #tpu.memory_space<vmem>>, %arg6: memref<2x7x128xf32, #tpu.memory_space<vmem>>) attributes {dimension_semantics = [#tpu.dimension_semantics<parallel>], iteration_bounds = array<i64: 1>, scalar_prefetch = 0 : i64, scratch_operands = 0 : i64, tpu.core_type = #tpu.core_type<tc>, window_params = [{pipeline_mode = #tpu.pipeline_mode<synchronous>, transform_indices = @transform_0, window_bounds = array<i64: 3, 128>}, {transform_indices = @transform_1, window_bounds = array<i64: 2, 3>}, {pipeline_mode = #tpu.pipeline_mode<synchronous>, transform_indices = @transform_2, window_bounds = array<i64: 1, 128>}, {pipeline_mode = #tpu.pipeline_mode<synchronous>, transform_indices = @transform_3, window_bounds = array<i64: 4, 128>}, {transform_indices = @transform_4, window_bounds = array<i64: 2, 4, 128>}, {transform_indices = @transform_5, window_bounds = array<i64: 2, 7, 128>}]} {
    %c0 = arith.constant 0 : index
    %c0_0 = arith.constant 0 : index
    %0 = vector.load %arg1[%c0, %c0_0] : memref<3x128xf32, #tpu.memory_space<vmem>>, vector<3x128xf32>
    %1 = vector.shape_cast %0 : vector<3x128xf32> to vector<1x3x128xf32>
    %c0_1 = arith.constant 0 : index
    %c0_2 = arith.constant 0 : index
    %2 = vector.load %arg2[%c0_1, %c0_2] : memref<2x3xf32, #tpu.memory_space<vmem>>, vector<2x3xf32>
    %3 = vector.shape_cast %2 : vector<2x3xf32> to vector<2x3x1xf32>
    %4 = vector.broadcast %1 : vector<1x3x128xf32> to vector<2x3x128xf32>
    %5 = vector.broadcast %3 : vector<2x3x1xf32> to vector<2x3x128xf32>
    %6 = arith.mulf %4, %5 : vector<2x3x128xf32>
    %c0_3 = arith.constant 0 : index
    %c0_4 = arith.constant 0 : index
    %7 = vector.load %arg3[%c0_3, %c0_4] : memref<1x128xf32, #tpu.memory_space<vmem>>, vector<1x128xf32>
    %8 = vector.shape_cast %7 : vector<1x128xf32> to vector<1x1x128xf32>
    %9 = vector.broadcast %8 : vector<1x1x128xf32> to vector<2x3x128xf32>
    %10 = arith.addf %6, %9 : vector<2x3x128xf32>
    %c0_5 = arith.constant 0 : index
    %c0_6 = arith.constant 0 : index
    %11 = vector.load %arg4[%c0_5, %c0_6] : memref<4x128xf32, #tpu.memory_space<vmem>>, vector<4x128xf32>
    %12 = vector.shape_cast %11 : vector<4x128xf32> to vector<1x4x128xf32>
    %c0_7 = arith.constant 0 : index
    %c0_8 = arith.constant 0 : index
    %c0_9 = arith.constant 0 : index
    %13 = vector.load %arg5[%c0_7, %c0_8, %c0_9] : memref<2x4x128xf32, #tpu.memory_space<vmem>>, vector<2x4x128xf32>
    %14 = vector.broadcast %12 : vector<1x4x128xf32> to vector<2x4x128xf32>
    %15 = arith.addf %14, %13 : vector<2x4x128xf32>
    %cst = arith.constant 5.000000e-01 : f32
    %16 = vector.broadcast %cst : f32 to vector<2x4x128xf32>
    %17 = arith.mulf %16, %15 : vector<2x4x128xf32>
    %c0_10 = arith.constant 0 : index
    %c0_11 = arith.constant 0 : index
    %c0_12 = arith.constant 0 : index
    %18 = vector.load %arg6[%c0_10, %c0_11, %c0_12] : memref<2x7x128xf32, #tpu.memory_space<vmem>>, vector<2x3x128xf32>
    tpu.vector_store %arg6[%c0_10, %c0_11, %c0_12], %10 {strides = array<i32>} : memref<2x7x128xf32, #tpu.memory_space<vmem>>, vector<2x3x128xf32>,
    %c0_13 = arith.constant 0 : index
    %c3 = arith.constant 3 : index
    %c0_14 = arith.constant 0 : index
    %19 = vector.load %arg6[%c0_13, %c3, %c0_14] : memref<2x7x128xf32, #tpu.memory_space<vmem>>, vector<2x4x128xf32>
    tpu.vector_store %arg6[%c0_13, %c3, %c0_14], %17 {strides = array<i32>} : memref<2x7x128xf32, #tpu.memory_space<vmem>>, vector<2x4x128xf32>,
    return
  }
  func.func @transform_0(%arg0: i32) -> (i32, i32) {
    %c0_i32 = arith.constant 0 : i32
    %c0_i32_0 = arith.constant 0 : i32
    %c0_i32_1 = arith.constant 0 : i32
    return %c0_i32, %c0_i32_0 : i32, i32
  }
  func.func @transform_1(%arg0: i32) -> (i32, i32) {
    %c0_i32 = arith.constant 0 : i32
    %c0_i32_0 = arith.constant 0 : i32
    return %arg0, %c0_i32 : i32, i32
  }
  func.func @transform_2(%arg0: i32) -> (i32, i32) {
    %c0_i32 = arith.constant 0 : i32
    %c0_i32_0 = arith.constant 0 : i32
    %c0_i32_1 = arith.constant 0 : i32
    return %c0_i32, %c0_i32_0 : i32, i32
  }
  func.func @transform_3(%arg0: i32) -> (i32, i32) {
    %c0_i32 = arith.constant 0 : i32
    %c0_i32_0 = arith.constant 0 : i32
    %c0_i32_1 = arith.constant 0 : i32
    return %c0_i32, %c0_i32_0 : i32, i32
  }
  func.func @transform_4(%arg0: i32) -> (i32, i32, i32) {
    %c0_i32 = arith.constant 0 : i32
    %c0_i32_0 = arith.constant 0 : i32
    %c0_i32_1 = arith.constant 0 : i32
    return %arg0, %c0_i32, %c0_i32_0 : i32, i32, i32
  }
  func.func @transform_5(%arg0: i32) -> (i32, i32, i32) {
    %c0_i32 = arith.constant 0 : i32
    %c0_i32_0 = arith.constant 0 : i32
    %c0_i32_1 = arith.constant 0 : i32
    return %arg0, %c0_i32, %c0_i32_0 : i32, i32, i32
  }
}

</mosaic_0001>

<bundles_post_ra>
// kernel: cm2_feature_processor_forward.5
= control target key start
LH: loop header
LB: loop body
LE: loop exit
PB: predicated region body
PF: predicated region fallthrough
CT: control target
= control target key end

     0   :  { %v22_v0 = vlaneseq  ;;  %s123_s1 = inlined_call_operand.vmem [shape: f32[2,3], index: 1, kind: input, shape index: {}]   ;;  %s124_s3 = inlined_call_operand.vmem [shape: f32[4,128], index: 3, kind: input, shape index: {}]   ;;  %s125_s4 = inlined_call_operand.vmem [shape: f32[2,4,128], index: 4, kind: input, shape index: {}]   ;;  %s126_s5 = inlined_call_operand.vmem [shape: f32[2,7,128], index: 5, kind: output, shape index: {}]   ;;  %s127_s0 = inlined_call_operand.vmem [shape: f32[3,128], index: 0, kind: input, shape index: {}]   ;;  %s128_s2 = inlined_call_operand.vmem [shape: f32[1,128], index: 2, kind: input, shape index: {}]  }
   0x1   :  { %v47_v1 = vld [vmem:[%s124_s3] sm:$0xf]  ;;  %v49_v4 = vld [vmem:[%s125_s4 + $0x4] sm:$0xf] }
   0x2   :  { %v23_v2 = vshrl.u32 %v22_v0, 7  ;;  %v48_v3 = vld [vmem:[%s125_s4] sm:$0xf]  ;;  %v51_v7 = vadd.f32 %v49_v4, %v47_v1 }
   0x3   :  { %v21_v5 = vld [vmem:[%s123_s1] sm:$0x3]  ;;  %v50_v6 = vadd.f32 %v48_v3, %v47_v1 }
   0x4   :  { %v24_v8 = vsub.s32 0, %v23_v2  ;;  %v31_v9 = vsub.s32 1, %v23_v2  ;;  %v53_v11 = vmul.f32 0.5, %v51_v7  ;;  %v20_v14 = vld [vmem:[%s127_s0] sm:$0x7] }
   0x5   :  { %v52_v10 = vmul.f32 0.5, %v50_v6  ;;  %v62_v15 = vld [vmem:[%s128_s2] ss:$0 sm:$0xff] }
   0x6   :  { %v25_v12 = vrot.slane %v21_v5, %v24_v8  ;;  %57 = vst [vmem:[%s126_s5 + $0xb] sm:$0xf] %v53_v11  ;;  %v32_v13 = vrot.slane %v21_v5, %v31_v9 }
   0x7   :  { %56 = vst [vmem:[%s126_s5 + $0x3] sm:$0xf] %v52_v10 }
   0x8   :  { %27 = vbcast.lane.b32.xlu0 %v25_v12, 256 }
   0xc   :  { %34 = vbcast.lane.b32.xlu0 %v32_v13, 256 }
  0x7a   :  { %v28_v16 = vpop.permute.xlu0 %27 }
  0x7b   :  { %v36_v17 = vmul.f32 %v28_v16, %v20_v14 }
  0x7d   :  { %v45_v18 = vadd.f32 %v62_v15, %v36_v17 }
  0x7e   :  { %v35_v19 = vpop.permute.xlu0 %34 }
  0x7f   :  { %54 = vst [vmem:[%s126_s5] sm:$0x7] %v45_v18  ;;  %v37_v20 = vmul.f32 %v35_v19, %v20_v14 }
  0x81   :  { %v46_v21 = vadd.f32 %v62_v15, %v37_v20 }
  0x83   :  { %55 = vst [vmem:[%s126_s5 + $0x8] sm:$0x7] %v46_v21 }

// kernel: cm2_feature_processor_forward.4
= control target key start
LH: loop header
LB: loop body
LE: loop exit
PB: predicated region body
PF: predicated region fallthrough
CT: control target
= control target key end

     0   :  { %vm294_vm0 = vcmask 64512   ;;  %vm329_vm1 = vcmask 1041409   ;;  %vm331_vm2 = vcmask 1042434   ;;  %vm333_vm3 = vcmask 1043459   ;;  %s901_s0 = inlined_call_operand.vmem [shape: bf16[8,8,256], index: 0, kind: input, shape index: {}]   ;;  %s902_s1 = inlined_call_operand.vmem [shape: f32[8,8], index: 1, kind: input, shape index: {}]   ;;  %s903_s4 = inlined_call_operand.vmem [shape: bf16[256,128], index: 4, kind: input, shape index: {}]   ;;  %s904_s3 = inlined_call_operand.vmem [shape: f32[1,256], index: 3, kind: input, shape index: {}]   ;;  %s905_s2 = inlined_call_operand.vmem [shape: f32[1,256], index: 2, kind: input, shape index: {}]   ;;  %s906_s5 = inlined_call_operand.vmem [shape: f32[8,128], index: 5, kind: output, shape index: {}]  }
   0x1   :  { %v23_v0 = vld [vmem:[%s901_s0 + $0x10] sm:$0xff]  ;;  %v21_v1 = vld [vmem:[%s901_s0] sm:$0xff]  ;;  %v24_v2 = vld [vmem:[%s901_s0 + $0x18] sm:$0xff]  ;;  %vm335_vm4 = vcmask 1044484   ;;  %vm337_vm5 = vcmask 1045509   ;;  %vm339_vm6 = vcmask 1046534  }
   0x2   :  { %v658_v3 = vunpack.c.l.bf16 %v23_v0  ;;  %v660_v4 = vunpack.c.h.bf16 %v23_v0  ;;  %v662_v5 = vunpack.c.l.bf16 %v21_v1  ;;  %v664_v6 = vunpack.c.h.bf16 %v21_v1  ;;  %v22_v7 = vld [vmem:[%s901_s0 + $0x8] sm:$0xff]  ;;  %v25_v20 = vld [vmem:[%s901_s0 + $0x20] sm:$0xff]  ;;  %v27_v34 = vld [vmem:[%s901_s0 + $0x30] sm:$0xff] }
   0x3   :  { %v669_v8 = vunpack.c.l.bf16 %v24_v2  ;;  %v671_v9 = vunpack.c.h.bf16 %v24_v2  ;;  %v673_v10 = vunpack.c.l.bf16 %v22_v7  ;;  %v675_v11 = vunpack.c.h.bf16 %v22_v7  ;;  %v26_v27 = vld [vmem:[%s901_s0 + $0x28] sm:$0xff]  ;;  %v28_v41 = vld [vmem:[%s901_s0 + $0x38] sm:$0xff]  ;;  %v293_v56 = vld [vmem:[%s902_s1] sm:$0xff] }
   0x4   :  { %v51_v12 = vadd.f32 %v660_v4, %v658_v3  ;;  %v45_v13 = vadd.f32 %v664_v6, %v662_v5  ;;  %v69_v15 = vmul.f32 %v662_v5, %v662_v5  ;;  %v70_v16 = vmul.f32 %v664_v6, %v664_v6  ;;  %v585_v58 = vld [vmem:[%s903_s4 + $0x40] sm:$0xff]   ;;  %v587_v60 = vld [vmem:[%s903_s4 + $0x48] sm:$0xff]   ;;  %v589_v62 = vld [vmem:[%s903_s4 + $0x50] sm:$0xff]  }
   0x5   :  { %v54_v14 = vadd.f32 %v671_v9, %v669_v8  ;;  %v48_v17 = vadd.f32 %v675_v11, %v673_v10  ;;  %v71_v18 = vmul.f32 %v673_v10, %v673_v10  ;;  %v72_v19 = vmul.f32 %v675_v11, %v675_v11  ;;  %v586_v59 = vld [vmem:[%s903_s4] sm:$0xff]   ;;  %563 = vmatprep.subr.bf16.mxu0 %v585_v58  ;;  %v588_v61 = vld [vmem:[%s903_s4 + $0x8] sm:$0xff]   ;;  %v590_v63 = vld [vmem:[%s903_s4 + $0x10] sm:$0xff]  }
   0x6   :  { %52 = vadd.xlane.f32.xlu1 %v51_v12  ;;  %46 = vadd.xlane.f32.xlu0 %v45_v13  ;;  %v85_v21 = vadd.f32 %v70_v16, %v69_v15  ;;  %v73_v22 = vmul.f32 %v658_v3, %v658_v3  ;;  %v74_v24 = vmul.f32 %v660_v4, %v660_v4  ;;  %v700_v25 = vunpack.c.l.bf16 %v25_v20  ;;  %v591_v0 = vld [vmem:[%s903_s4 + $0x58] sm:$0xff]   ;;  %v593_v2 = vld [vmem:[%s903_s4 + $0x60] sm:$0xff]   ;;  %v595_v12 = vld [vmem:[%s903_s4 + $0x68] sm:$0xff]  }
   0x7   :  { %v88_v23 = vadd.f32 %v72_v19, %v71_v18  ;;  %v702_v26 = vunpack.c.h.bf16 %v25_v20  ;;  %v75_v28 = vmul.f32 %v669_v8, %v669_v8  ;;  %v76_v29 = vmul.f32 %v671_v9, %v671_v9  ;;  %564 = vmatpush3.bf16.msra.mxu0 %v586_v59  ;;  %v592_v1 = vld [vmem:[%s903_s4 + $0x18] sm:$0xff]   ;;  %v594_v7 = vld [vmem:[%s903_s4 + $0x20] sm:$0xff]   ;;  %v596_v13 = vld [vmem:[%s903_s4 + $0x28] sm:$0xff]  }
   0x8   :  { %v91_v30 = vadd.f32 %v74_v24, %v73_v22  ;;  %v713_v32 = vunpack.c.l.bf16 %v26_v27  ;;  %v715_v33 = vunpack.c.h.bf16 %v26_v27  ;;  %v77_v36 = vmul.f32 %v700_v25, %v700_v25  ;;  %565 = vmatprep.subr.bf16.mxu0 %v587_v60  ;;  %v598_v15 = vld [vmem:[%s903_s4 + $0x30] sm:$0xff]   ;;  %v599_v16 = vld [vmem:[%s903_s4 + $0x78] sm:$0xff]  }
   0x9   :  { %v57_v31 = vadd.f32 %v702_v26, %v700_v25  ;;  %v94_v35 = vadd.f32 %v76_v29, %v75_v28  ;;  %v78_v38 = vmul.f32 %v702_v26, %v702_v26  ;;  %v726_v39 = vunpack.c.l.bf16 %v27_v34 }
   0xa   :  { %55 = vadd.xlane.f32.xlu1 %v54_v14  ;;  %49 = vadd.xlane.f32.xlu0 %v48_v17  ;;  %v60_v37 = vadd.f32 %v715_v33, %v713_v32  ;;  %v728_v40 = vunpack.c.h.bf16 %v27_v34  ;;  %v79_v42 = vmul.f32 %v713_v32, %v713_v32  ;;  %v80_v43 = vmul.f32 %v715_v33, %v715_v33  ;;  %v597_v14 = vld [vmem:[%s903_s4 + $0x70] sm:$0xff]   ;;  %v600_v17 = vld [vmem:[%s903_s4 + $0x38] sm:$0xff]  }
   0xb   :  { %v97_v44 = vadd.f32 %v78_v38, %v77_v36  ;;  %v739_v46 = vunpack.c.l.bf16 %v28_v41  ;;  %v741_v47 = vunpack.c.h.bf16 %v28_v41  ;;  %v81_v49 = vmul.f32 %v726_v39, %v726_v39  ;;  %566 = vmatpush3.bf16.msra.mxu0 %v588_v61 }
   0xc   :  { %v63_v45 = vadd.f32 %v728_v40, %v726_v39  ;;  %v100_v48 = vadd.f32 %v80_v43, %v79_v42  ;;  %v82_v50 = vmul.f32 %v728_v40, %v728_v40  ;;  %v295_v57 = vsel %vm294_vm0, %v293_v56, 0.0  ;;  %567 = vmatprep.subr.bf16.mxu0 %v589_v62 }
   0xd   :  { %v66_v51 = vadd.f32 %v741_v47, %v739_v46  ;;  %v83_v52 = vmul.f32 %v739_v46, %v739_v46  ;;  %v84_v53 = vmul.f32 %v741_v47, %v741_v47  ;;  %vm341_vm7 = vcmask 1047559  }
   0xe   :  { %89 = vadd.xlane.f32.xlu1 %v88_v23  ;;  %86 = vadd.xlane.f32.xlu0 %v85_v21  ;;  %v103_v55 = vadd.f32 %v82_v50, %v81_v49 }
   0xf   :  { %v106_v54 = vadd.f32 %v84_v53, %v83_v52  ;;  %568 = vmatpush3.bf16.msra.mxu0 %v590_v63 }
  0x10   :  { %569 = vmatprep.subr.bf16.mxu0 %v591_v0 }
  0x12   :  { %92 = vadd.xlane.f32.xlu1 %v91_v30  ;;  %58 = vadd.xlane.f32.xlu0 %v57_v31 }
  0x13   :  { %570 = vmatpush3.bf16.msra.mxu0 %v592_v1 }
  0x14   :  { %571 = vmatprep.subr.bf16.mxu0 %v593_v2 }
  0x16   :  { %95 = vadd.xlane.f32.xlu1 %v94_v35  ;;  %61 = vadd.xlane.f32.xlu0 %v60_v37 }
  0x17   :  { %572 = vmatpush3.bf16.msra.mxu0 %v594_v7 }
  0x18   :  { %573 = vmatprep.subr.bf16.mxu0 %v595_v12 }
  0x1a   :  { %98 = vadd.xlane.f32.xlu1 %v97_v44  ;;  %64 = vadd.xlane.f32.xlu0 %v63_v45 }
  0x1b   :  { %574 = vmatpush3.bf16.msra.mxu0 %v596_v13 }
  0x1c   :  { %575 = vmatprep.subr.bf16.mxu0 %v597_v14 }
  0x1e   :  { %101 = vadd.xlane.f32.xlu1 %v100_v48  ;;  %67 = vadd.xlane.f32.xlu0 %v66_v51 }
  0x1f   :  { %576 = vmatpush3.bf16.msra.mxu0 %v598_v15 }
  0x20   :  { %577 = vmatprep.subr.bf16.mxu0 %v599_v16 }
  0x22   :  { %107 = vadd.xlane.f32.xlu1 %v106_v54  ;;  %104 = vadd.xlane.f32.xlu0 %v103_v55 }
  0x23   :  { %578 = vmatpush3.bf16.msra.mxu0 %v600_v17 }
  0x26   :  { %296 = vadd.xlane.f32.xlu0 %v295_v57 }
  0x93   :  { %v53_v18 = vpop.xlane.xlu1 %52  ;;  %v47_v19 = vpop.xlane.xlu0 %46 }
  0x94   :  { %v804_v22 = vmul.f32 0.00390625, %v47_v19  ;;  %v806_v24 = vmul.f32 0.00390625, %v53_v18 }
  0x96   :  { %v125_v31 = vmul.f32 %v804_v22, %v804_v22  ;;  %v127_v37 = vmul.f32 %v806_v24, %v806_v24 }
  0x97   :  { %v56_v20 = vpop.xlane.xlu1 %55  ;;  %v50_v21 = vpop.xlane.xlu0 %49 }
  0x98   :  { %v110_v23 = vmul.f32 0.00390625, %v50_v21  ;;  %v812_v42 = vmul.f32 0.00390625, %v56_v20 }
  0x9a   :  { %v126_v30 = vmul.f32 %v110_v23, %v110_v23  ;;  %v128_v55 = vmul.f32 %v812_v42, %v812_v42  ;;  %v151_v19 = vsub.f32 %v673_v10, %v110_v23  ;;  %v153_v10 = vsub.f32 %v658_v3, %v806_v24 }
  0x9b   :  { %v90_v27 = vpop.xlane.xlu1 %89  ;;  %v87_v28 = vpop.xlane.xlu0 %86 }
  0x9c   :  { %v118_v29 = vmul.f32 0.00390625, %v90_v27  ;;  %v117_v34 = vmul.f32 0.00390625, %v87_v28  ;;  %v152_v27 = vsub.f32 %v675_v11, %v110_v23 }
  0x9e   :  { %v134_v35 = vsub.f32 %v118_v29, %v126_v30  ;;  %v133_v36 = vsub.f32 %v117_v34, %v125_v31  ;;  %v149_v30 = vsub.f32 %v662_v5, %v804_v22  ;;  %v150_v31 = vsub.f32 %v664_v6, %v804_v22 }
  0x9f   :  { %v93_v38 = vpop.xlane.xlu1 %92  ;;  %v59_v41 = vpop.xlane.xlu0 %58  ;;  %v154_v6 = vsub.f32 %v660_v4, %v806_v24 }
  0xa0   :  { %v142_v43 = vmax.f32 %v134_v35, 0.0  ;;  %v141_v44 = vmax.f32 %v133_v36, 0.0  ;;  %v119_v45 = vmul.f32 0.00390625, %v93_v38  ;;  %v814_v51 = vmul.f32 0.00390625, %v59_v41 }
  0xa1   :  { %v303_v35 = vlaneseq }
  0xa2   :  { %v166_v48 = vadd.f32 1e-05, %v142_v43  ;;  %v165_v49 = vadd.f32 1e-05, %v141_v44  ;;  %v135_v50 = vsub.f32 %v119_v45, %v127_v37  ;;  %v129_v60 = vmul.f32 %v814_v51, %v814_v51 }
  0xa3   :  { %v96_v52 = vpop.xlane.xlu1 %95  ;;  %v62_v53 = vpop.xlane.xlu0 %61 }
  0xa4   :  { %601 = vrsqrt.f32 %v166_v48  ;;  %v143_v54 = vmax.f32 %v135_v50, 0.0  ;;  %v120_v56 = vmul.f32 0.00390625, %v96_v52  ;;  %v820_v63 = vmul.f32 0.00390625, %v62_v53 }
  0xa5   :  { %603 = vrsqrt.f32 %v165_v49  ;;  %v840_v48 = vshrl.u32 %v303_v35, 7 }
  0xa6   :  { %v167_v57 = vadd.f32 1e-05, %v143_v54  ;;  %v136_v58 = vsub.f32 %v120_v56, %v128_v55  ;;  %v130_v14 = vmul.f32 %v820_v63, %v820_v63 }
  0xa7   :  { %v99_v59 = vpop.xlane.xlu1 %98  ;;  %v65_v61 = vpop.xlane.xlu0 %64  ;;  %v305_v4 = vsub.s32 0, %v840_v48 }
  0xa8   :  { %605 = vrsqrt.f32 %v167_v57  ;;  %v144_v62 = vmax.f32 %v136_v58, 0.0  ;;  %v121_v0 = vmul.f32 0.00390625, %v99_v59  ;;  %v834_v45 = vmul.f32 0.00390625, %v65_v61 }
  0xa9   :  { %v155_v58 = vsub.f32 %v669_v8, %v812_v42  ;;  %v158_v8 = vsub.f32 %v702_v26, %v814_v51  ;;  %v309_v26 = vsub.s32 1, %v840_v48 }
  0xaa   :  { %v137_v1 = vsub.f32 %v121_v0, %v129_v60  ;;  %v168_v2 = vadd.f32 1e-05, %v144_v62  ;;  %v131_v56 = vmul.f32 %v834_v45, %v834_v45  ;;  %v156_v60 = vsub.f32 %v671_v9, %v812_v42 }
  0xab   :  { %v102_v7 = vpop.xlane.xlu1 %101  ;;  %v68_v15 = vpop.xlane.xlu0 %67  ;;  %v160_v9 = vsub.f32 %v715_v33, %v820_v63  ;;  %v354_v33 = vld [vmem:[%s904_s3] sm:$0x3] }
  0xac   :  { %v145_v12 = vmax.f32 %v137_v1, 0.0  ;;  %v122_v13 = vmul.f32 0.00390625, %v102_v7  ;;  %607 = vrsqrt.f32 %v168_v2  ;;  %v826_v29 = vmul.f32 0.00390625, %v68_v15 }
  0xad   :  { %v159_v15 = vsub.f32 %v713_v32, %v820_v63 }
  0xae   :  { %v602_v16 = vpop.eup %601  ;;  %v169_v17 = vadd.f32 1e-05, %v145_v12  ;;  %v138_v18 = vsub.f32 %v122_v13, %v130_v14  ;;  %v132_v5 = vmul.f32 %v826_v29, %v826_v29  ;;  %v157_v12 = vsub.f32 %v700_v25, %v814_v51 }
  0xaf   :  { %v108_v20 = vpop.xlane.xlu1 %107  ;;  %v604_v21 = vpop.eup %603  ;;  %v183_v34 = vmul.f32 %v602_v16, %v151_v19  ;;  %v184_v37 = vmul.f32 %v602_v16, %v152_v27 }
  0xb0   :  { %609 = vrsqrt.f32 %v169_v17  ;;  %v146_v28 = vmax.f32 %v138_v18, 0.0  ;;  %v124_v41 = vmul.f32 0.00390625, %v108_v20  ;;  %v181_v11 = vmul.f32 %v604_v21, %v149_v30  ;;  %v105_v43 = vpop.xlane.xlu0 %104 }
  0xb1   :  { %v182_v23 = vmul.f32 %v604_v21, %v150_v31  ;;  %v209_v22 = vrot.slane %v183_v34, 4  ;;  %v215_v3 = vrot.slane %v184_v37, 4  ;;  %v123_v50 = vmul.f32 0.00390625, %v105_v43  ;;  %v301_v43 = vld [vmem:[%s905_s2] sm:$0x3] }
  0xb2   :  { %v606_v36 = vpop.eup %605  ;;  %v170_v38 = vadd.f32 1e-05, %v146_v28  ;;  %v140_v49 = vsub.f32 %v124_v41, %v132_v5  ;;  %v197_v52 = vrot.slane %v181_v11, 4 }
  0xb3   :  { %v185_v44 = vmul.f32 %v606_v36, %v153_v10  ;;  %v203_v53 = vrot.slane %v182_v23, 4  ;;  %v186_v54 = vmul.f32 %v606_v36, %v154_v6  ;;  %v210_v59 = vadd.f32 %v209_v22, %v183_v34 }
  0xb4   :  { %611 = vrsqrt.f32 %v170_v38  ;;  %v216_v61 = vadd.f32 %v215_v3, %v184_v37  ;;  %v148_v62 = vmax.f32 %v140_v49, 0.0  ;;  %v139_v0 = vsub.f32 %v123_v50, %v131_v56 }
  0xb5   :  { %v221_v55 = vrot.slane %v185_v44, 4  ;;  %v198_v1 = vadd.f32 %v197_v52, %v181_v11  ;;  %v204_v2 = vadd.f32 %v203_v53, %v182_v23  ;;  %v227_v7 = vrot.slane %v186_v54, 4 }
  0xb6   :  { %v608_v57 = vpop.eup %607  ;;  %v211_v16 = vrot.slane %v210_v59, 2  ;;  %v217_v19 = vrot.slane %v216_v61, 2  ;;  %v172_v21 = vadd.f32 1e-05, %v148_v62  ;;  %v147_v27 = vmax.f32 %v139_v0, 0.0 }
  0xb7   :  { %v222_v13 = vadd.f32 %v221_v55, %v185_v44  ;;  %v187_v14 = vmul.f32 %v608_v57, %v155_v58  ;;  %v188_v17 = vmul.f32 %v608_v57, %v156_v60  ;;  %v199_v25 = vrot.slane %v198_v1, 2 }
  0xb8   :  { %v205_v28 = vrot.slane %v204_v2, 2  ;;  %v228_v30 = vadd.f32 %v227_v7, %v186_v54  ;;  %613 = vrsqrt.f32 %v172_v21  ;;  %v171_v10 = vadd.f32 1e-05, %v147_v27 }
  0xb9   :  { %v223_v51 = vrot.slane %v222_v13, 2  ;;  %v233_v31 = vrot.slane %v187_v14, 4  ;;  %v239_v35 = vrot.slane %v188_v17, 4  ;;  %v212_v63 = vadd.f32 %v211_v16, %v210_v59 }
  0xba   :  { %v610_v24 = vpop.eup %609  ;;  %v218_v37 = vadd.f32 %v217_v19, %v216_v61  ;;  %v229_v41 = vrot.slane %v228_v30, 2  ;;  %615 = vrsqrt.f32 %v171_v10  ;;  %v200_v44 = vadd.f32 %v199_v25, %v198_v1 }
  0xbb   :  { %v189_v42 = vmul.f32 %v610_v24, %v157_v12  ;;  %v190_v20 = vmul.f32 %v610_v24, %v158_v8  ;;  %v234_v5 = vadd.f32 %v233_v31, %v187_v14  ;;  %v864_v6 = vrot.slane %v354_v33, %v305_v4 }
  0xbc   :  { %v866_v22 = vrot.slane %v354_v33, %v309_v26  ;;  %v206_v48 = vadd.f32 %v205_v28, %v204_v2  ;;  %v224_v3 = vadd.f32 %v223_v51, %v222_v13  ;;  %v240_v49 = vadd.f32 %v239_v35, %v188_v17 }
  0xbd   :  { %v245_v36 = vrot.slane %v189_v42, 4  ;;  %v251_v38 = vrot.slane %v190_v20, 4  ;;  %v213_v52 = vrot.slane %v212_v63, 1  ;;  %v868_v54 = vrot.slane %v301_v43, %v305_v4 }
  0xbe   :  { %v612_v18 = vpop.eup %611  ;;  %v870_v55 = vrot.slane %v301_v43, %v309_v26  ;;  %v219_v56 = vrot.slane %v218_v37, 1  ;;  %v230_v57 = vadd.f32 %v229_v41, %v228_v30  ;;  %v201_v24 = vrot.slane %v200_v44, 1 }
  0xbf   :  { %v191_v34 = vmul.f32 %v612_v18, %v159_v15  ;;  %v192_v32 = vmul.f32 %v612_v18, %v160_v9  ;;  %v246_v50 = vadd.f32 %v245_v36, %v189_v42  ;;  %v252_v53 = vadd.f32 %v251_v38, %v190_v20 }
  0xc0   :  { %v235_v60 = vrot.slane %v234_v5, 2  ;;  %v161_v61 = vsub.f32 %v726_v39, %v834_v45  ;;  %v162_v62 = vsub.f32 %v728_v40, %v834_v45  ;;  %v207_v0 = vrot.slane %v206_v48, 1 }
  0xc1   :  { %v257_v11 = vrot.slane %v191_v34, 4  ;;  %v263_v23 = vrot.slane %v192_v32, 4  ;;  %v225_v1 = vrot.slane %v224_v3, 1  ;;  %v241_v2 = vrot.slane %v240_v49, 2 }
  0xc2   :  { %v247_v4 = vrot.slane %v246_v50, 2  ;;  %v214_v7 = vadd.f32 %v213_v52, %v212_v63  ;;  %v253_v12 = vrot.slane %v252_v53, 2  ;;  %v163_v13 = vsub.f32 %v739_v46, %v826_v29  ;;  %v614_v14 = vpop.eup %613 }
  0xc3   :  { %v258_v58 = vadd.f32 %v257_v11, %v191_v34  ;;  %v264_v59 = vadd.f32 %v263_v23, %v192_v32  ;;  %v164_v8 = vsub.f32 %v741_v47, %v826_v29  ;;  %v220_v15 = vadd.f32 %v219_v56, %v218_v37  ;;  %v297_v47 = vpop.xlane.xlu0 %296 }
  0xc4   :  { %v231_v16 = vrot.slane %v230_v57, 1  ;;  %v202_v9 = vadd.f32 %v201_v24, %v200_v44  ;;  %v236_v40 = vadd.f32 %v235_v60, %v234_v5  ;;  %v195_v45 = vmul.f32 %v614_v14, %v163_v13  ;;  %v616_v18 = vpop.eup %615 }
  0xc5   :  { %v259_v39 = vrot.slane %v258_v58, 2  ;;  %v265_v17 = vrot.slane %v264_v59, 2  ;;  %v196_v42 = vmul.f32 %v614_v14, %v164_v8  ;;  %v208_v19 = vadd.f32 %v207_v0, %v206_v48 }
  0xc6   :  { %v226_v20 = vadd.f32 %v225_v1, %v224_v3  ;;  %v242_v21 = vadd.f32 %v241_v2, %v240_v49  ;;  %v248_v27 = vadd.f32 %v247_v4, %v246_v50  ;;  %v281_v25 = vrot.slane %v195_v45, 4 }
  0xc7   :  { %v193_v46 = vmul.f32 %v616_v18, %v161_v61  ;;  %v194_v28 = vmul.f32 %v616_v18, %v162_v62  ;;  %v254_v29 = vadd.f32 %v253_v12, %v252_v53  ;;  %v232_v30 = vadd.f32 %v231_v16, %v230_v57 }
  0xc8   :  { %v260_v26 = vadd.f32 %v259_v39, %v258_v58  ;;  %v266_v51 = vadd.f32 %v265_v17, %v264_v59  ;;  %v287_v31 = vrot.slane %v196_v42, 4  ;;  %v237_v34 = vrot.slane %v236_v40, 1 }
  0xc9   :  { %v269_v32 = vrot.slane %v193_v46, 4  ;;  %v275_v35 = vrot.slane %v194_v28, 4  ;;  %v282_v36 = vadd.f32 %v281_v25, %v195_v45  ;;  %v249_v10 = vrot.slane %v248_v27, 1 }
  0xca   :  { %v298_v33 = vadd.f32 1e-12, %v297_v47  ;;  %v243_v63 = vrot.slane %v242_v21, 1  ;;  %v288_v37 = vadd.f32 %v287_v31, %v196_v42  ;;  %v255_v11 = vrot.slane %v254_v29, 1 }
  0xcb   :  { %v270_v38 = vadd.f32 %v269_v32, %v193_v46  ;;  %v283_v41 = vrot.slane %v282_v36, 2  ;;  %v276_v23 = vadd.f32 %v275_v35, %v194_v28  ;;  %v261_v43 = vrot.slane %v260_v26, 1 }
  0xcc   :  { %v330_v44 = vsel %vm329_vm1, %v214_v7, %v202_v9  ;;  %v267_v5 = vrot.slane %v266_v51, 1  ;;  %v289_v48 = vrot.slane %v288_v37, 2  ;;  %v238_v3 = vadd.f32 %v237_v34, %v236_v40 }
  0xcd   :  { %v271_v49 = vrot.slane %v270_v38, 2  ;;  %v284_v50 = vadd.f32 %v283_v41, %v282_v36  ;;  %v277_v52 = vrot.slane %v276_v23, 2  ;;  %v250_v53 = vadd.f32 %v249_v10, %v248_v27 }
  0xce   :  { %617 = vrcp.f32 %v298_v33  ;;  %v244_v56 = vadd.f32 %v243_v63, %v242_v21  ;;  %v290_v57 = vadd.f32 %v289_v48, %v288_v37  ;;  %v256_v24 = vadd.f32 %v255_v11, %v254_v29 }
  0xcf   :  { %v272_v58 = vadd.f32 %v271_v49, %v270_v38  ;;  %v285_v59 = vrot.slane %v284_v50, 1  ;;  %v278_v60 = vadd.f32 %v277_v52, %v276_v23  ;;  %v262_v61 = vadd.f32 %v261_v43, %v260_v26 }
  0xd0   :  { %v268_v62 = vadd.f32 %v267_v5, %v266_v51  ;;  %v291_v0 = vrot.slane %v290_v57, 1  ;;  %v343_v1 = vsel %vm329_vm1, %v220_v15, %v208_v19  ;;  %v332_v4 = vsel %vm331_vm2, %v226_v20, %v330_v44 }
  0xd1   :  { %v273_v2 = vrot.slane %v272_v58, 1  ;;  %v279_v7 = vrot.slane %v278_v60, 1  ;;  %v344_v12 = vsel %vm331_vm2, %v232_v30, %v343_v1  ;;  %v286_v13 = vadd.f32 %v285_v59, %v284_v50 }
  0xd2   :  { %v334_v8 = vsel %vm333_vm3, %v238_v3, %v332_v4  ;;  %v292_v14 = vadd.f32 %v291_v0, %v290_v57  ;;  %v345_v16 = vsel %vm333_vm3, %v244_v56, %v344_v12  ;;  %v366_v27 = vmul.f32 %v864_v6, %v297_v47 }
  0xd3   :  { %v274_v39 = vadd.f32 %v273_v2, %v272_v58  ;;  %v336_v17 = vsel %vm335_vm4, %v250_v53, %v334_v8  ;;  %v280_v9 = vadd.f32 %v279_v7, %v278_v60  ;;  %v346_v40 = vsel %vm335_vm4, %v256_v24, %v345_v16 }
  0xd4   :  { %v338_v15 = vsel %vm337_vm5, %v262_v61, %v336_v17  ;;  %v347_v45 = vsel %vm337_vm5, %v268_v62, %v346_v40  ;;  %v367_v25 = vmul.f32 %v866_v22, %v297_v47 }
  0xd5   :  { %v340_v42 = vsel %vm339_vm6, %v274_v39, %v338_v15  ;;  %v348_v18 = vsel %vm339_vm6, %v280_v9, %v347_v45 }
  0xd6   :  { %v342_v19 = vsel %vm341_vm7, %v286_v13, %v340_v42  ;;  %v349_v20 = vsel %vm341_vm7, %v292_v14, %v348_v18 }
  0xd7   :  { %v352_v21 = vmul.f32 %v342_v19, %v868_v54  ;;  %v353_v46 = vmul.f32 %v349_v20, %v870_v55 }
  0xd8   :  { %v618_v28 = vpop.eup %617 }
  0xd9   :  { %v368_v29 = vadd.f32 %v366_v27, %v352_v21  ;;  %v369_v30 = vadd.f32 %v367_v25, %v353_v46 }
  0xdb   :  { %v371_v26 = vmul.f32 %v618_v28, %v369_v30  ;;  %v370_v51 = vmul.f32 %v618_v28, %v368_v29 }
  0xdd   :  { %v373_v31 = vpack.c.bf16 %v371_v26, %v371_v26  ;;  %v372_v34 = vpack.c.bf16 %v370_v51, %v370_v51 }
  0xdf   :  { %534 = vmatprep.mubr.bf16.mxu0 %v373_v31 }
  0xe0   :  { %535 = vmatmul.mubr.bf16.vlgmr.msra.gmra.mrb[0].mxu0 %v372_v34 }
 0x1b3   :  { %v579_v32 = vpop.f32.mrb[0].mxu0 }
 0x1b4   :  { %v580_v35 = vpop.f32.mrb[1].mxu0 }
 0x1b5   :  { %v581_v36 = vadd.f32 %v580_v35, %v579_v32  ;;  %v582_v10 = vpop.f32.mrb[2].mxu0 }
 0x1b6   :  { %v583_v54 = vpop.f32.mrb[3].mxu0 }
 0x1b7   :  { %542 = vst [vmem:[%s906_s5] sm:$0xff] %v581_v36 }

// kernel: cm2_feature_processor_forward.3
= control target key start
LH: loop header
LB: loop body
LE: loop exit
PB: predicated region body
PF: predicated region fallthrough
CT: control target
= control target key end

     0   :  { %vm537_vm0 = vcmask 63488   ;;  %vm533_vm1 = vcmask 64512   ;;  %vm589_vm2 = vcmask 1041409   ;;  %vm591_vm3 = vcmask 1042434   ;;  %s1550_s0 = inlined_call_operand.vmem [shape: bf16[15,8,256], index: 0, kind: input, shape index: {}]   ;;  %s1551_s1 = inlined_call_operand.vmem [shape: f32[15,8], index: 1, kind: input, shape index: {}]   ;;  %s1552_s4 = inlined_call_operand.vmem [shape: bf16[256,128], index: 4, kind: input, shape index: {}]   ;;  %s1553_s2 = inlined_call_operand.vmem [shape: f32[1,256], index: 2, kind: input, shape index: {}]   ;;  %s1554_s3 = inlined_call_operand.vmem [shape: f32[1,256], index: 3, kind: input, shape index: {}]   ;;  %s1555_s5 = inlined_call_operand.vmem [shape: f32[15,128], index: 5, kind: output, shape index: {}]  }
   0x1   :  { %v23_v0 = vld [vmem:[%s1550_s0 + $0x10] sm:$0xff]  ;;  %v21_v1 = vld [vmem:[%s1550_s0] sm:$0xff]  ;;  %v22_v7 = vld [vmem:[%s1550_s0 + $0x8] sm:$0xff]  ;;  %vm593_vm4 = vcmask 1043459   ;;  %vm595_vm5 = vcmask 1044484   ;;  %vm597_vm6 = vcmask 1045509  }
   0x2   :  { %v29_v2 = vld [vmem:[%s1550_s0 + $0x40] sm:$0xff]  ;;  %v958_v3 = vunpack.c.l.bf16 %v23_v0  ;;  %v960_v4 = vunpack.c.h.bf16 %v23_v0  ;;  %v962_v5 = vunpack.c.l.bf16 %v21_v1  ;;  %v964_v6 = vunpack.c.h.bf16 %v21_v1  ;;  %v24_v8 = vld [vmem:[%s1550_s0 + $0x18] sm:$0xff]  ;;  %v30_v13 = vld [vmem:[%s1550_s0 + $0x48] sm:$0xff] }
   0x3   :  { %v972_v9 = vunpack.c.l.bf16 %v29_v2  ;;  %v974_v10 = vunpack.c.h.bf16 %v29_v2  ;;  %v976_v11 = vunpack.c.l.bf16 %v22_v7  ;;  %v978_v12 = vunpack.c.h.bf16 %v22_v7  ;;  %v31_v22 = vld [vmem:[%s1550_s0 + $0x50] sm:$0xff]  ;;  %v25_v29 = vld [vmem:[%s1550_s0 + $0x20] sm:$0xff]  ;;  %v32_v36 = vld [vmem:[%s1550_s0 + $0x58] sm:$0xff] }
   0x4   :  { %v72_v14 = vadd.f32 %v960_v4, %v958_v3  ;;  %v66_v15 = vadd.f32 %v964_v6, %v962_v5  ;;  %v987_v16 = vunpack.c.l.bf16 %v24_v8  ;;  %v989_v17 = vunpack.c.h.bf16 %v24_v8  ;;  %v33_v49 = vld [vmem:[%s1550_s0 + $0x60] sm:$0xff]  ;;  %v26_v50 = vld [vmem:[%s1550_s0 + $0x28] sm:$0xff]  ;;  %v27_v0 = vld [vmem:[%s1550_s0 + $0x30] sm:$0xff] }
   0x5   :  { %v90_v18 = vadd.f32 %v974_v10, %v972_v9  ;;  %v69_v19 = vadd.f32 %v978_v12, %v976_v11  ;;  %v995_v20 = vunpack.c.l.bf16 %v30_v13  ;;  %v997_v21 = vunpack.c.h.bf16 %v30_v13  ;;  %v34_v63 = vld [vmem:[%s1550_s0 + $0x68] sm:$0xff] }
   0x6   :  { %73 = vadd.xlane.f32.xlu1 %v72_v14  ;;  %67 = vadd.xlane.f32.xlu0 %v66_v15  ;;  %v111_v23 = vmul.f32 %v962_v5, %v962_v5  ;;  %v112_v24 = vmul.f32 %v964_v6, %v964_v6  ;;  %v75_v25 = vadd.f32 %v989_v17, %v987_v16  ;;  %v1010_v27 = vunpack.c.l.bf16 %v31_v22 }
   0x7   :  { %v93_v26 = vadd.f32 %v997_v21, %v995_v20  ;;  %v1012_v28 = vunpack.c.h.bf16 %v31_v22  ;;  %v1017_v31 = vunpack.c.l.bf16 %v25_v29  ;;  %v1021_v33 = vunpack.c.h.bf16 %v25_v29 }
   0x8   :  { %v141_v30 = vadd.f32 %v112_v24, %v111_v23  ;;  %v113_v34 = vmul.f32 %v976_v11, %v976_v11  ;;  %v114_v35 = vmul.f32 %v978_v12, %v978_v12  ;;  %v115_v37 = vmul.f32 %v958_v3, %v958_v3 }
   0x9   :  { %v96_v32 = vadd.f32 %v1012_v28, %v1010_v27  ;;  %v116_v38 = vmul.f32 %v960_v4, %v960_v4  ;;  %v78_v39 = vadd.f32 %v1021_v33, %v1017_v31  ;;  %v1036_v41 = vunpack.c.l.bf16 %v32_v36 }
   0xa   :  { %91 = vadd.xlane.f32.xlu1 %v90_v18  ;;  %70 = vadd.xlane.f32.xlu0 %v69_v19  ;;  %v144_v40 = vadd.f32 %v114_v35, %v113_v34  ;;  %v1038_v42 = vunpack.c.h.bf16 %v32_v36  ;;  %v129_v44 = vmul.f32 %v995_v20, %v995_v20  ;;  %v130_v45 = vmul.f32 %v997_v21, %v997_v21 }
   0xb   :  { %v147_v43 = vadd.f32 %v116_v38, %v115_v37  ;;  %v127_v47 = vmul.f32 %v972_v9, %v972_v9  ;;  %v128_v48 = vmul.f32 %v974_v10, %v974_v10  ;;  %v1056_v51 = vunpack.c.l.bf16 %v33_v49 }
   0xc   :  { %v99_v46 = vadd.f32 %v1038_v42, %v1036_v41  ;;  %v1058_v52 = vunpack.c.h.bf16 %v33_v49  ;;  %v168_v53 = vadd.f32 %v130_v45, %v129_v44  ;;  %v1060_v55 = vunpack.c.l.bf16 %v26_v50 }
   0xd   :  { %v165_v54 = vadd.f32 %v128_v48, %v127_v47  ;;  %v1062_v56 = vunpack.c.h.bf16 %v26_v50  ;;  %v131_v58 = vmul.f32 %v1010_v27, %v1010_v27  ;;  %v132_v59 = vmul.f32 %v1012_v28, %v1012_v28 }
   0xe   :  { %76 = vadd.xlane.f32.xlu1 %v75_v25  ;;  %94 = vadd.xlane.f32.xlu0 %v93_v26  ;;  %1568 = vst [vmem:[#allocation2_spill] sm:$0xff] %v1060_v55  ;;  %v102_v57 = vadd.f32 %v1058_v52, %v1056_v51  ;;  %v117_v61 = vmul.f32 %v987_v16, %v987_v16  ;;  %v1082_v1 = vunpack.c.l.bf16 %v34_v63  ;;  %v1084_v2 = vunpack.c.h.bf16 %v34_v63  ;;  %v35_v25 = vld [vmem:[%s1550_s0 + $0x70] sm:$0xff]  ;;  %v28_v26 = vld [vmem:[%s1550_s0 + $0x38] sm:$0xff]  ;;  %v532_v63 = vld [vmem:[%s1551_s1 + $0x8] sm:$0x7f] }
   0xf   :  { %1569 = vst [vmem:[#allocation3_spill] sm:$0xff] %v1062_v56  ;;  %v81_v60 = vadd.f32 %v1062_v56, %v1060_v55  ;;  %v118_v62 = vmul.f32 %v989_v17, %v989_v17  ;;  %v171_v7 = vadd.f32 %v132_v59, %v131_v58  ;;  %v1086_v13 = vunpack.c.l.bf16 %v27_v0 }
  0x10   :  { %1570 = vst [vmem:[#allocation4_spill] sm:$0xff] %v1082_v1  ;;  %1571 = vst [vmem:[#allocation5_spill] sm:$0xff] %v1084_v2  ;;  %v1088_v14 = vunpack.c.h.bf16 %v27_v0  ;;  %v105_v15 = vadd.f32 %v1084_v2, %v1082_v1  ;;  %v133_v18 = vmul.f32 %v1036_v41, %v1036_v41  ;;  %v134_v19 = vmul.f32 %v1038_v42, %v1038_v42  ;;  %v531_v0 = vld [vmem:[%s1551_s1] sm:$0xff] }
  0x11   :  { %v150_v8 = vadd.f32 %v118_v62, %v117_v61  ;;  %1572 = vst [vmem:[#allocation6_spill] sm:$0xff] %v1086_v13  ;;  %v119_v23 = vmul.f32 %v1017_v31, %v1017_v31  ;;  %v120_v24 = vmul.f32 %v1021_v33, %v1021_v33  ;;  %v1108_v29 = vunpack.c.l.bf16 %v35_v25 }
  0x12   :  { %142 = vadd.xlane.f32.xlu1 %v141_v30  ;;  %97 = vadd.xlane.f32.xlu0 %v96_v32  ;;  %1573 = vst [vmem:[#allocation7_spill] sm:$0xff] %v1088_v14  ;;  %v84_v22 = vadd.f32 %v1088_v14, %v1086_v13  ;;  %v1110_v30 = vunpack.c.h.bf16 %v35_v25  ;;  %v174_v32 = vadd.f32 %v134_v19, %v133_v18  ;;  %v1112_v35 = vunpack.c.l.bf16 %v28_v26  ;;  %v870_v18 = vld [vmem:[%s1552_s4] sm:$0xff]   ;;  %v871_v19 = vld [vmem:[%s1552_s4 + $0x48] sm:$0xff]   ;;  %v875_v25 = vld [vmem:[%s1552_s4 + $0x58] sm:$0xff]  }
  0x13   :  { %v153_v34 = vadd.f32 %v120_v24, %v119_v23  ;;  %v1114_v36 = vunpack.c.h.bf16 %v28_v26  ;;  %v135_v38 = vmul.f32 %v1056_v51, %v1056_v51  ;;  %v122_v44 = vmul.f32 %v1062_v56, %v1062_v56  ;;  %v873_v23 = vld [vmem:[%s1552_s4 + $0x50] sm:$0xff]   ;;  %v876_v26 = vld [vmem:[%s1552_s4 + $0x18] sm:$0xff]  }
  0x14   :  { %v108_v37 = vadd.f32 %v1110_v30, %v1108_v29  ;;  %v138_v47 = vmul.f32 %v1084_v2, %v1084_v2  ;;  %v123_v49 = vmul.f32 %v1086_v13, %v1086_v13  ;;  %v124_v50 = vmul.f32 %v1088_v14, %v1088_v14  ;;  %v874_v24 = vld [vmem:[%s1552_s4 + $0x10] sm:$0xff]  }
  0x15   :  { %v125_v59 = vmul.f32 %v1112_v35, %v1112_v35  ;;  %vm599_vm7 = vcmask 1046534   ;;  %vm601_vm8 = vcmask 1047559  }
  0x16   :  { %79 = vadd.xlane.f32.xlu1 %v78_v39  ;;  %145 = vadd.xlane.f32.xlu0 %v144_v40  ;;  %v136_v39 = vmul.f32 %v1058_v52, %v1058_v52  ;;  %v87_v40 = vadd.f32 %v1114_v36, %v1112_v35  ;;  %v159_v58 = vadd.f32 %v124_v50, %v123_v49 }
  0x18   :  { %v177_v45 = vadd.f32 %v136_v39, %v135_v38  ;;  %v880_v38 = vld [vmem:[%s1552_s4 + $0x28] sm:$0xff]   ;;  %v881_v39 = vld [vmem:[%s1552_s4 + $0x70] sm:$0xff]  }
  0x1a   :  { %148 = vadd.xlane.f32.xlu1 %v147_v43  ;;  %100 = vadd.xlane.f32.xlu0 %v99_v46  ;;  %v121_v43 = vmul.f32 %v1060_v55, %v1060_v55  ;;  %v137_v46 = vmul.f32 %v1082_v1, %v1082_v1 }
  0x1c   :  { %v156_v48 = vadd.f32 %v122_v44, %v121_v43  ;;  %v883_v43 = vld [vmem:[%s1552_s4 + $0x78] sm:$0xff]  }
  0x1d   :  { %v884_v44 = vld [vmem:[%s1552_s4 + $0x38] sm:$0xff]  }
  0x1e   :  { %169 = vadd.xlane.f32.xlu1 %v168_v53  ;;  %166 = vadd.xlane.f32.xlu0 %v165_v54  ;;  %v180_v53 = vadd.f32 %v138_v47, %v137_v46  ;;  %v139_v54 = vmul.f32 %v1108_v29, %v1108_v29 }
  0x22   :  { %103 = vadd.xlane.f32.xlu1 %v102_v57  ;;  %82 = vadd.xlane.f32.xlu0 %v81_v60  ;;  %v140_v57 = vmul.f32 %v1110_v30, %v1110_v30  ;;  %v126_v60 = vmul.f32 %v1114_v36, %v1114_v36 }
  0x24   :  { %v183_v61 = vadd.f32 %v140_v57, %v139_v54  ;;  %v162_v62 = vadd.f32 %v126_v60, %v125_v59 }
  0x26   :  { %172 = vadd.xlane.f32.xlu1 %v171_v7  ;;  %151 = vadd.xlane.f32.xlu0 %v150_v8  ;;  %v538_v7 = vsel %vm537_vm0, %v532_v63, 0.0  ;;  %v534_v8 = vsel %vm533_vm1, %v531_v0, 0.0 }
  0x2a   :  { %106 = vadd.xlane.f32.xlu1 %v105_v15  ;;  %85 = vadd.xlane.f32.xlu0 %v84_v22  ;;  %v869_v15 = vld [vmem:[%s1552_s4 + $0x40] sm:$0xff]   ;;  %v872_v22 = vld [vmem:[%s1552_s4 + $0x8] sm:$0xff]  }
  0x2b   :  { %847 = vmatprep.subr.bf16.mxu0 %v869_v15 }
  0x2c   :  { %848 = vmatpush3.bf16.msra.mxu0 %v870_v18 }
  0x2d   :  { %849 = vmatprep.subr.bf16.mxu0 %v871_v19 }
  0x2e   :  { %175 = vadd.xlane.f32.xlu1 %v174_v32  ;;  %154 = vadd.xlane.f32.xlu0 %v153_v34  ;;  %v877_v32 = vld [vmem:[%s1552_s4 + $0x60] sm:$0xff]  }
  0x2f   :  { %v878_v34 = vld [vmem:[%s1552_s4 + $0x20] sm:$0xff]  }
  0x30   :  { %850 = vmatpush3.bf16.msra.mxu0 %v872_v22 }
  0x31   :  { %851 = vmatprep.subr.bf16.mxu0 %v873_v23 }
  0x32   :  { %109 = vadd.xlane.f32.xlu1 %v108_v37  ;;  %88 = vadd.xlane.f32.xlu0 %v87_v40  ;;  %v879_v37 = vld [vmem:[%s1552_s4 + $0x68] sm:$0xff]   ;;  %v882_v40 = vld [vmem:[%s1552_s4 + $0x30] sm:$0xff]  }
  0x34   :  { %852 = vmatpush3.bf16.msra.mxu0 %v874_v24 }
  0x35   :  { %853 = vmatprep.subr.bf16.mxu0 %v875_v25 }
  0x36   :  { %178 = vadd.xlane.f32.xlu1 %v177_v45  ;;  %157 = vadd.xlane.f32.xlu0 %v156_v48 }
  0x38   :  { %854 = vmatpush3.bf16.msra.mxu0 %v876_v26 }
  0x39   :  { %855 = vmatprep.subr.bf16.mxu0 %v877_v32 }
  0x3a   :  { %181 = vadd.xlane.f32.xlu1 %v180_v53  ;;  %160 = vadd.xlane.f32.xlu0 %v159_v58 }
  0x3c   :  { %856 = vmatpush3.bf16.msra.mxu0 %v878_v34 }
  0x3d   :  { %857 = vmatprep.subr.bf16.mxu0 %v879_v37 }
  0x3e   :  { %184 = vadd.xlane.f32.xlu1 %v183_v61  ;;  %163 = vadd.xlane.f32.xlu0 %v162_v62  ;;  %v549_v61 = vlaneseq }
  0x40   :  { %858 = vmatpush3.bf16.msra.mxu0 %v880_v38  ;;  %v550_v19 = vshrl.u32 %v549_v61, 7 }
  0x41   :  { %859 = vmatprep.subr.bf16.mxu0 %v881_v39  ;;  %v547_v39 = vld [vmem:[%s1553_s2] sm:$0x3] }
  0x42   :  { %539 = vadd.xlane.f32.xlu1 %v538_v7  ;;  %535 = vadd.xlane.f32.xlu0 %v534_v8 }
  0x44   :  { %860 = vmatpush3.bf16.msra.mxu0 %v882_v40  ;;  %v551_v40 = vsub.s32 0, %v550_v19 }
  0x45   :  { %861 = vmatprep.subr.bf16.mxu0 %v883_v43  ;;  %v555_v43 = vsub.s32 1, %v550_v19 }
  0x48   :  { %862 = vmatpush3.bf16.msra.mxu0 %v884_v44 }
  0x93   :  { %v74_v45 = vpop.xlane.xlu1 %73  ;;  %v68_v46 = vpop.xlane.xlu0 %67 }
  0x94   :  { %v1198_v53 = vmul.f32 0.00390625, %v68_v46  ;;  %v1206_v7 = vmul.f32 0.00390625, %v74_v45  ;;  %v630_v46 = vld [vmem:[%s1554_s3] sm:$0x3] }
  0x95   :  { %v1236_v19 = vrot.slane %v630_v46, %v555_v43 }
  0x96   :  { %v216_v60 = vmul.f32 %v1198_v53, %v1198_v53  ;;  %v218_v37 = vmul.f32 %v1206_v7, %v1206_v7 }
  0x97   :  { %v92_v47 = vpop.xlane.xlu1 %91  ;;  %v71_v48 = vpop.xlane.xlu0 %70  ;;  %1577 = vst [vmem:[#allocation11_spill] sm:$0xff] %v1236_v19 }
  0x98   :  { %v1200_v58 = vmul.f32 0.00390625, %v71_v48  ;;  %v1210_v24 = vmul.f32 0.00390625, %v92_v47 }
  0x9a   :  { %v217_v15 = vmul.f32 %v1200_v58, %v1200_v58 }
  0x9b   :  { %v77_v49 = vpop.xlane.xlu1 %76  ;;  %v95_v50 = vpop.xlane.xlu0 %94 }
  0x9c   :  { %v1212_v25 = vmul.f32 0.00390625, %v95_v50  ;;  %v224_v50 = vmul.f32 %v1210_v24, %v1210_v24 }
  0x9e   :  { %v225_v48 = vmul.f32 %v1212_v25, %v1212_v25 }
  0x9f   :  { %v143_v54 = vpop.xlane.xlu1 %142  ;;  %v98_v57 = vpop.xlane.xlu0 %97 }
  0xa0   :  { %v201_v59 = vmul.f32 0.00390625, %v143_v54 }
  0xa2   :  { %v231_v62 = vsub.f32 %v201_v59, %v216_v60  ;;  %v1226_v59 = vrot.slane %v547_v39, %v551_v40  ;;  %v1228_v60 = vrot.slane %v547_v39, %v555_v43 }
  0xa3   :  { %v1204_v63 = vpop.xlane.xlu1 %79  ;;  %v146_v0 = vpop.xlane.xlu0 %145 }
  0xa4   :  { %v246_v8 = vmax.f32 %v231_v62, 0.0  ;;  %v202_v18 = vmul.f32 0.00390625, %v146_v0  ;;  %1574 = vst [vmem:[#allocation8_spill] sm:$0xff] %v1226_v59  ;;  %1575 = vst [vmem:[#allocation9_spill] sm:$0xff] %v1228_v60 }
  0xa6   :  { %v291_v22 = vadd.f32 1e-05, %v246_v8  ;;  %v232_v23 = vsub.f32 %v202_v18, %v217_v15  ;;  %v265_v8 = vsub.f32 %v958_v3, %v1206_v7  ;;  %v1232_v15 = vmul.f32 0.00390625, %v77_v49 }
  0xa7   :  { %v149_v26 = vpop.xlane.xlu1 %148  ;;  %v101_v32 = vpop.xlane.xlu0 %100  ;;  %v1234_v18 = vrot.slane %v630_v46, %v551_v40 }
  0xa8   :  { %885 = vrsqrt.f32 %v291_v22  ;;  %v247_v34 = vmax.f32 %v232_v23, 0.0  ;;  %v203_v38 = vmul.f32 0.00390625, %v149_v26 }
  0xa9   :  { %1576 = vst [vmem:[#allocation10_spill] sm:$0xff] %v1234_v18  ;;  %v1583_v18 = vsub.f32 %v974_v10, %v1210_v24 }
  0xaa   :  { %v292_v44 = vadd.f32 1e-05, %v247_v34  ;;  %v233_v45 = vsub.f32 %v203_v38, %v218_v37  ;;  %v261_v37 = vsub.f32 %v962_v5, %v1198_v53  ;;  %v262_v38 = vsub.f32 %v964_v6, %v1198_v53 }
  0xab   :  { %v170_v47 = vpop.xlane.xlu1 %169  ;;  %v167_v54 = vpop.xlane.xlu0 %166  ;;  %v264_v5 = vsub.f32 %v978_v12, %v1200_v58 }
  0xac   :  { %887 = vrsqrt.f32 %v292_v44  ;;  %v248_v61 = vmax.f32 %v233_v45, 0.0  ;;  %v210_v62 = vmul.f32 0.00390625, %v170_v47  ;;  %v209_v0 = vmul.f32 0.00390625, %v167_v54 }
  0xad   :  { %v1248_v44 = vmul.f32 0.00390625, %v98_v57  ;;  %v263_v47 = vsub.f32 %v976_v11, %v1200_v58  ;;  %v219_v58 = vmul.f32 %v1232_v15, %v1232_v15 }
  0xae   :  { %v293_v23 = vadd.f32 1e-05, %v248_v61  ;;  %v240_v26 = vsub.f32 %v210_v62, %v225_v48  ;;  %v239_v34 = vsub.f32 %v209_v0, %v224_v50  ;;  %v1263_v0 = vmul.f32 0.00390625, %v1204_v63 }
  0xaf   :  { %v104_v40 = vpop.xlane.xlu1 %103  ;;  %v83_v43 = vpop.xlane.xlu0 %82 }
  0xb0   :  { %889 = vrsqrt.f32 %v293_v23  ;;  %v255_v45 = vmax.f32 %v240_v26, 0.0  ;;  %v254_v46 = vmax.f32 %v239_v34, 0.0  ;;  %v226_v34 = vmul.f32 %v1248_v44, %v1248_v44 }
  0xb1   :  { %v1283_v22 = vmul.f32 %v1263_v0, %v1263_v0 }
  0xb2   :  { %v886_v48 = vpop.eup %885  ;;  %v300_v54 = vadd.f32 1e-05, %v255_v45  ;;  %v299_v61 = vadd.f32 1e-05, %v254_v46 }
  0xb3   :  { %v321_v62 = vmul.f32 %v886_v48, %v261_v37  ;;  %v322_v11 = vmul.f32 %v886_v48, %v262_v38  ;;  %v173_v12 = vpop.xlane.xlu1 %172  ;;  %v152_v23 = vpop.xlane.xlu0 %151  ;;  %v1271_v37 = vmul.f32 0.00390625, %v101_v32 }
  0xb4   :  { %891 = vrsqrt.f32 %v300_v54  ;;  %v211_v26 = vmul.f32 0.00390625, %v173_v12  ;;  %v204_v53 = vmul.f32 0.00390625, %v152_v23  ;;  %v1277_v23 = vmul.f32 0.00390625, %v104_v40 }
  0xb5   :  { %v351_v6 = vrot.slane %v321_v62, 4  ;;  %893 = vrsqrt.f32 %v299_v61  ;;  %v357_v38 = vrot.slane %v322_v11, 4 }
  0xb6   :  { %v888_v63 = vpop.eup %887  ;;  %v241_v48 = vsub.f32 %v211_v26, %v226_v34  ;;  %v234_v39 = vsub.f32 %v204_v53, %v219_v58 }
  0xb7   :  { %v323_v12 = vmul.f32 %v888_v63, %v263_v47  ;;  %v324_v49 = vmul.f32 %v888_v63, %v264_v5  ;;  %v107_v50 = vpop.xlane.xlu1 %106  ;;  %v86_v57 = vpop.xlane.xlu0 %85  ;;  %v352_v26 = vadd.f32 %v351_v6, %v321_v62  ;;  %v1287_v47 = vmul.f32 0.00390625, %v83_v43 }
  0xb8   :  { %v256_v61 = vmax.f32 %v241_v48, 0.0  ;;  %v249_v45 = vmax.f32 %v234_v39, 0.0  ;;  %v358_v5 = vadd.f32 %v357_v38, %v322_v11  ;;  %v1297_v6 = vmul.f32 %v1271_v37, %v1271_v37 }
  0xb9   :  { %v363_v53 = vrot.slane %v323_v12, 4  ;;  %1578 = vst [vmem:[#allocation12_spill] sm:$0xff] %v1287_v47  ;;  %v369_v39 = vrot.slane %v324_v49, 4  ;;  %v1579_v62 = vsub.f32 %v960_v4, %v1206_v7  ;;  %v353_v38 = vrot.slane %v352_v26, 2 }
  0xba   :  { %v890_v40 = vpop.eup %889  ;;  %v301_v63 = vadd.f32 1e-05, %v256_v61  ;;  %v294_v32 = vadd.f32 1e-05, %v249_v45 }
  0xbb   :  { %v364_v48 = vadd.f32 %v363_v53, %v323_v12  ;;  %v1293_v46 = vpop.xlane.xlu1 %175  ;;  %v325_v43 = vmul.f32 %v890_v40, %v265_v8  ;;  %v326_v11 = vmul.f32 %v890_v40, %v1579_v62  ;;  %v1311_v53 = vmul.f32 0.00390625, %v107_v50  ;;  %v155_v54 = vpop.xlane.xlu0 %154 }
  0xbc   :  { %895 = vrsqrt.f32 %v301_v63  ;;  %v359_v8 = vrot.slane %v358_v5, 2  ;;  %v370_v40 = vadd.f32 %v369_v39, %v324_v49  ;;  %v1315_v63 = vmul.f32 %v1277_v23, %v1277_v23 }
  0xbd   :  { %v375_v34 = vrot.slane %v325_v43, 4  ;;  %v381_v58 = vrot.slane %v326_v11, 4  ;;  %897 = vrsqrt.f32 %v294_v32  ;;  %v365_v7 = vrot.slane %v364_v48, 2 }
  0xbe   :  { %v892_v3 = vpop.eup %891  ;;  %v1319_v62 = vmul.f32 %v1287_v47, %v1287_v47  ;;  %v1580_v12 = vsub.f32 %v995_v20, %v1212_v25  ;;  %v1581_v32 = vsub.f32 %v997_v21, %v1212_v25  ;;  %v1582_v49 = vsub.f32 %v972_v9, %v1210_v24 }
  0xbf   :  { %v894_v4 = vpop.eup %893  ;;  %v376_v61 = vadd.f32 %v375_v34, %v325_v43  ;;  %v382_v50 = vadd.f32 %v381_v58, %v326_v11  ;;  %v1335_v58 = vmul.f32 0.00390625, %v86_v57  ;;  %v1337_v43 = vpop.xlane.xlu1 %109  ;;  %v354_v20 = vadd.f32 %v353_v38, %v352_v26 }
  0xc0   :  { %v339_v45 = vmul.f32 %v892_v3, %v1580_v12  ;;  %v340_v19 = vmul.f32 %v892_v3, %v1581_v32  ;;  %v337_v39 = vmul.f32 %v894_v4, %v1582_v49  ;;  %v338_v60 = vmul.f32 %v894_v4, %v1583_v18  ;;  %v1339_v49 = vpop.xlane.xlu0 %88 }
  0xc1   :  { %v360_v11 = vadd.f32 %v359_v8, %v358_v5  ;;  %v371_v25 = vrot.slane %v370_v40, 2  ;;  %v377_v3 = vrot.slane %v376_v61, 2  ;;  %v366_v59 = vadd.f32 %v365_v7, %v364_v48 }
  0xc2   :  { %v459_v12 = vrot.slane %v339_v45, 4  ;;  %v465_v21 = vrot.slane %v340_v19, 4  ;;  %v447_v32 = vrot.slane %v337_v39, 4  ;;  %v453_v9 = vrot.slane %v338_v60, 4 }
  0xc3   :  { %v383_v10 = vrot.slane %v382_v50, 2  ;;  %v355_v38 = vrot.slane %v354_v20, 1  ;;  %v361_v8 = vrot.slane %v360_v11, 1  ;;  %v372_v47 = vadd.f32 %v371_v25, %v370_v40  ;;  %v179_v7 = vpop.xlane.xlu1 %178 }
  0xc4   :  { %v460_v24 = vadd.f32 %v459_v12, %v339_v45  ;;  %v466_v18 = vadd.f32 %v465_v21, %v340_v19  ;;  %v448_v4 = vadd.f32 %v447_v32, %v337_v39  ;;  %v454_v34 = vadd.f32 %v453_v9, %v338_v60  ;;  %v158_v25 = vpop.xlane.xlu0 %157 }
  0xc5   :  { %v378_v55 = vadd.f32 %v377_v3, %v376_v61  ;;  %v1584_v48 = vsub.f32 %v1010_v27, %v1248_v44  ;;  %v1585_v60 = vsub.f32 %v1012_v28, %v1248_v44  ;;  %v367_v12 = vrot.slane %v366_v59, 1 }
  0xc6   :  { %v896_v5 = vpop.eup %895  ;;  %v461_v1 = vrot.slane %v460_v24, 2  ;;  %v467_v56 = vrot.slane %v466_v18, 2  ;;  %v384_v21 = vadd.f32 %v383_v10, %v382_v50  ;;  %v449_v32 = vrot.slane %v448_v4, 2 }
  0xc7   :  { %v341_v45 = vmul.f32 %v896_v5, %v1584_v48  ;;  %v342_v19 = vmul.f32 %v896_v5, %v1585_v60  ;;  %v898_v39 = vpop.eup %897  ;;  %v455_v40 = vrot.slane %v454_v34, 2  ;;  %v1586_v27 = vsub.f32 %v987_v16, %v1232_v15 }
  0xc8   :  { %v462_v26 = vadd.f32 %v461_v1, %v460_v24  ;;  %v468_v57 = vadd.f32 %v467_v56, %v466_v18  ;;  %v212_v28 = vmul.f32 0.00390625, %v1293_v46  ;;  %v205_v44 = vmul.f32 0.00390625, %v155_v54  ;;  %v182_v46 = vpop.xlane.xlu1 %181 }
  0xc9   :  { %v471_v61 = vrot.slane %v341_v45, 4  ;;  %v477_v3 = vrot.slane %v342_v19, 4  ;;  %v327_v48 = vmul.f32 %v898_v39, %v1586_v27  ;;  %v373_v5 = vrot.slane %v372_v47, 1 }
  0xca   :  { %v379_v60 = vrot.slane %v378_v55, 1  ;;  %v1587_v10 = vsub.f32 %v989_v17, %v1232_v15  ;;  %v1360_v1 = vadd.f32 %v355_v38, %v354_v20  ;;  %v1362_v56 = vadd.f32 %v361_v8, %v360_v11  ;;  %v161_v8 = vpop.xlane.xlu0 %160 }
  0xcb   :  { %v472_v50 = vadd.f32 %v471_v61, %v341_v45  ;;  %v385_v24 = vrot.slane %v384_v21, 1  ;;  %v387_v18 = vrot.slane %v327_v48, 4  ;;  %v463_v14 = vrot.slane %v462_v26, 1 }
  0xcc   :  { %v328_v9 = vmul.f32 %v898_v39, %v1587_v10  ;;  %v469_v13 = vrot.slane %v468_v57, 1  ;;  %v450_v16 = vadd.f32 %v449_v32, %v448_v4  ;;  %v1364_v27 = vadd.f32 %v455_v40, %v454_v34 }
  0xcd   :  { %v1366_v54 = vadd.f32 %v367_v12, %v366_v59  ;;  %v478_v2 = vadd.f32 %v477_v3, %v342_v19  ;;  %v242_v45 = vsub.f32 %v212_v28, %v1297_v6  ;;  %v235_v17 = vsub.f32 %v205_v44, %v1283_v22 }
  0xce   :  { %v1370_v15 = vadd.f32 %v373_v5, %v372_v47  ;;  %v1372_v20 = vadd.f32 %v379_v60, %v378_v55  ;;  %v473_v11 = vrot.slane %v472_v50, 2  ;;  %v393_v38 = vrot.slane %v328_v9, 4  ;;  %v164_v5 = vpop.xlane.xlu0 %163 }
  0xcf   :  { %v1374_v39 = vadd.f32 %v385_v24, %v384_v21  ;;  %v388_v4 = vadd.f32 %v387_v18, %v327_v48  ;;  %v257_v34 = vmax.f32 %v242_v45, 0.0  ;;  %v250_v32 = vmax.f32 %v235_v17, 0.0  ;;  %v185_v48 = vpop.xlane.xlu1 %184 }
  0xd0   :  { %v1376_v40 = vadd.f32 %v463_v14, %v462_v26  ;;  %v1378_v59 = vadd.f32 %v469_v13, %v468_v57  ;;  %v451_v19 = vrot.slane %v450_v16, 1  ;;  %v457_v6 = vrot.slane %v1364_v27, 1 }
  0xd1   :  { %v479_v22 = vrot.slane %v478_v2, 2  ;;  %v302_v47 = vadd.f32 1e-05, %v257_v34  ;;  %v295_v12 = vadd.f32 1e-05, %v250_v32  ;;  %v1382_v55 = vmul.f32 0.00390625, %v1337_v43 }
  0xd2   :  { %v474_v61 = vadd.f32 %v473_v11, %v472_v50  ;;  %v394_v3 = vadd.f32 %v393_v38, %v328_v9  ;;  %v213_v21 = vmul.f32 0.00390625, %v179_v7  ;;  %v206_v28 = vmul.f32 0.00390625, %v158_v25 }
  0xd3   :  { %v389_v44 = vrot.slane %v388_v4, 2  ;;  %899 = vrsqrt.f32 %v302_v47  ;;  %v1385_v14 = vmul.f32 0.00390625, %v1339_v49  ;;  %v229_v13 = vmul.f32 %v1311_v53, %v1311_v53 }
  0xd4   :  { %901 = vrsqrt.f32 %v295_v12  ;;  %v243_v57 = vsub.f32 %v213_v21, %v1315_v63  ;;  %v236_v26 = vsub.f32 %v206_v28, %v1319_v62  ;;  %v214_v43 = vmul.f32 0.00390625, %v182_v46 }
  0xd5   :  { %v222_v7 = vmul.f32 %v1335_v58, %v1335_v58  ;;  %v207_v9 = vmul.f32 0.00390625, %v161_v8  ;;  %v230_v25 = vmul.f32 %v1382_v55, %v1382_v55  ;;  %v215_v60 = vmul.f32 0.00390625, %v185_v48 }
  0xd6   :  { %v395_v49 = vrot.slane %v394_v3, 2  ;;  %v258_v50 = vmax.f32 %v243_v57, 0.0  ;;  %v251_v10 = vmax.f32 %v236_v26, 0.0  ;;  %v244_v24 = vsub.f32 %v214_v43, %v229_v13 }
  0xd7   :  { %v237_v18 = vsub.f32 %v207_v9, %v222_v7  ;;  %v245_v45 = vsub.f32 %v215_v60, %v230_v25  ;;  %v223_v63 = vmul.f32 %v1385_v14, %v1385_v14  ;;  %v208_v62 = vmul.f32 0.00390625, %v164_v5  ;;  %v1410_v25 = vpop.xlane.xlu1 %539 }
  0xd8   :  { %v480_v46 = vadd.f32 %v479_v22, %v478_v2  ;;  %v303_v17 = vadd.f32 1e-05, %v258_v50  ;;  %v296_v11 = vadd.f32 1e-05, %v251_v10  ;;  %v259_v38 = vmax.f32 %v244_v24, 0.0 }
  0xd9   :  { %v452_v34 = vadd.f32 %v451_v19, %v450_v16  ;;  %v252_v8 = vmax.f32 %v237_v18, 0.0  ;;  %v260_v32 = vmax.f32 %v245_v45, 0.0  ;;  %v238_v47 = vsub.f32 %v208_v62, %v223_v63 }
  0xda   :  { %v390_v12 = vadd.f32 %v389_v44, %v388_v4  ;;  %v396_v21 = vadd.f32 %v395_v49, %v394_v3  ;;  %903 = vrsqrt.f32 %v303_v17  ;;  %v304_v28 = vadd.f32 1e-05, %v259_v38 }
  0xdb   :  { %v475_v48 = vrot.slane %v474_v61, 1  ;;  %905 = vrsqrt.f32 %v296_v11  ;;  %v297_v13 = vadd.f32 1e-05, %v252_v8  ;;  %v253_v57 = vmax.f32 %v238_v47, 0.0 }
  0xdc   :  { %v458_v26 = vadd.f32 %v457_v6, %v1364_v27  ;;  %v481_v2 = vrot.slane %v480_v46, 1  ;;  %907 = vrsqrt.f32 %v304_v28  ;;  %v305_v22 = vadd.f32 1e-05, %v260_v32 }
  0xdd   :  { %v900_v43 = vpop.eup %899  ;;  %v289_v16 = vsub.f32 %v1108_v29, %v1382_v55  ;;  %v290_v4 = vsub.f32 %v1110_v30, %v1382_v55  ;;  %v275_v19 = vsub.f32 %v1112_v35, %v1385_v14  ;;  %909 = vrsqrt.f32 %v297_v13 }
  0xde   :  { %v902_v3 = vpop.eup %901  ;;  %v391_v44 = vrot.slane %v390_v12, 1  ;;  %v397_v5 = vrot.slane %v396_v21, 1  ;;  %v1588_v27 = vsub.f32 %v1036_v41, %v1271_v37  ;;  %v1589_v7 = vsub.f32 %v1038_v42, %v1271_v37 }
  0xdf   :  { %v1590_v60 = vsub.f32 %v1017_v31, %v1263_v0  ;;  %v1591_v50 = vsub.f32 %v1021_v33, %v1263_v0  ;;  %v298_v24 = vadd.f32 1e-05, %v253_v57  ;;  %v476_v18 = vadd.f32 %v475_v48, %v474_v61  ;;  %v1425_v0 = vpop.xlane.xlu0 %535 }
  0xe0   :  { %v343_v6 = vmul.f32 %v900_v43, %v1588_v27  ;;  %v344_v9 = vmul.f32 %v900_v43, %v1589_v7  ;;  %911 = vrsqrt.f32 %v305_v22  ;;  %v482_v41 = vadd.f32 %v481_v2, %v480_v46  ;;  %v1594_v43 = vld [vmem:[#allocation2_spill] sm:$0xff] }
  0xe1   :  { %v329_v49 = vmul.f32 %v902_v3, %v1590_v60  ;;  %v330_v10 = vmul.f32 %v902_v3, %v1591_v50  ;;  %v276_v42 = vsub.f32 %v1114_v36, %v1385_v14  ;;  %v542_v37 = vadd.f32 1e-12, %v1410_v25  ;;  %v1595_v3 = vld [vmem:[#allocation12_spill] sm:$0xff] }
  0xe2   :  { %v483_v45 = vrot.slane %v343_v6, 4  ;;  %v489_v63 = vrot.slane %v344_v9, 4  ;;  %v610_v38 = vsel %vm589_vm2, %v1376_v40, %v452_v34  ;;  %v616_v33 = vsel %vm589_vm2, %v1378_v59, %v458_v26 }
  0xe3   :  { %v399_v62 = vrot.slane %v329_v49, 4  ;;  %v405_v17 = vrot.slane %v330_v10, 4  ;;  %913 = vrsqrt.f32 %v298_v24  ;;  %v1428_v46 = vsel %vm591_vm3, %v476_v18, %v610_v38  ;;  %v1601_v24 = vld [vmem:[#allocation5_spill] sm:$0xff]  ;;  %v1605_v38 = vld [vmem:[#allocation7_spill] sm:$0xff] }
  0xe4   :  { %v484_v11 = vadd.f32 %v483_v45, %v343_v6  ;;  %v490_v31 = vadd.f32 %v489_v63, %v344_v9  ;;  %v904_v32 = vpop.eup %903  ;;  %v1431_v47 = vsel %vm591_vm3, %v482_v41, %v616_v33  ;;  %v1433_v28 = vadd.f32 %v391_v44, %v390_v12  ;;  %v1597_v44 = vld [vmem:[#allocation3_spill] sm:$0xff] }
  0xe5   :  { %v400_v61 = vadd.f32 %v399_v62, %v329_v49  ;;  %v406_v8 = vadd.f32 %v405_v17, %v330_v10  ;;  %v1435_v48 = vadd.f32 %v397_v5, %v396_v21  ;;  %v1440_v40 = vsel %vm589_vm2, %v1366_v54, %v1360_v1  ;;  %v906_v59 = vpop.eup %905  ;;  %v1599_v49 = vld [vmem:[#allocation4_spill] sm:$0xff]  ;;  %v1603_v62 = vld [vmem:[#allocation6_spill] sm:$0xff] }
  0xe6   :  { %v1592_v34 = vsub.f32 %v1056_v51, %v1277_v23  ;;  %v1593_v57 = vsub.f32 %v1058_v52, %v1277_v23  ;;  %915 = vrcp.f32 %v542_v37  ;;  %v1449_v12 = vadd.f32 1e-12, %v1425_v0  ;;  %v908_v21 = vpop.eup %907 }
  0xe7   :  { %v485_v2 = vrot.slane %v484_v11, 2  ;;  %v491_v22 = vrot.slane %v490_v31, 2  ;;  %v1596_v1 = vsub.f32 %v1594_v43, %v1595_v3  ;;  %v1598_v5 = vsub.f32 %v1597_v44, %v1595_v3  ;;  %v910_v27 = vpop.eup %909 }
  0xe8   :  { %v345_v13 = vmul.f32 %v904_v32, %v1592_v34  ;;  %v346_v26 = vmul.f32 %v904_v32, %v1593_v57  ;;  %v401_v6 = vrot.slane %v400_v61, 2  ;;  %v407_v7 = vrot.slane %v406_v8, 2 }
  0xe9   :  { %v331_v54 = vmul.f32 %v906_v59, %v1596_v1  ;;  %v332_v51 = vmul.f32 %v906_v59, %v1598_v5  ;;  %v1600_v50 = vsub.f32 %v1599_v49, %v1311_v53  ;;  %v1602_v18 = vsub.f32 %v1601_v24, %v1311_v53 }
  0xea   :  { %v495_v52 = vrot.slane %v345_v13, 4  ;;  %v501_v23 = vrot.slane %v346_v26, 4  ;;  %v1604_v17 = vsub.f32 %v1603_v62, %v1335_v58  ;;  %v1606_v33 = vsub.f32 %v1605_v38, %v1335_v58  ;;  %v912_v59 = vpop.eup %911 }
  0xeb   :  { %v411_v9 = vrot.slane %v331_v54, 4  ;;  %v417_v60 = vrot.slane %v332_v51, 4  ;;  %v347_v10 = vmul.f32 %v908_v21, %v1600_v50  ;;  %v348_v45 = vmul.f32 %v908_v21, %v1602_v18 }
  0xec   :  { %v496_v63 = vadd.f32 %v495_v52, %v345_v13  ;;  %v502_v41 = vadd.f32 %v501_v23, %v346_v26  ;;  %v333_v37 = vmul.f32 %v910_v27, %v1604_v17  ;;  %v334_v32 = vmul.f32 %v910_v27, %v1606_v33 }
  0xed   :  { %v1469_v34 = vadd.f32 %v411_v9, %v331_v54  ;;  %v1471_v57 = vadd.f32 %v417_v60, %v332_v51  ;;  %v507_v43 = vrot.slane %v347_v10, 4  ;;  %v513_v3 = vrot.slane %v348_v45, 4  ;;  %v914_v23 = vpop.eup %913 }
  0xee   :  { %v486_v1 = vadd.f32 %v485_v2, %v484_v11  ;;  %v492_v53 = vadd.f32 %v491_v22, %v490_v31  ;;  %v497_v21 = vrot.slane %v496_v63, 2  ;;  %v503_v13 = vrot.slane %v502_v41, 2 }
  0xef   :  { %v1473_v26 = vadd.f32 %v401_v6, %v400_v61  ;;  %v1475_v44 = vadd.f32 %v407_v7, %v406_v8  ;;  %v508_v5 = vadd.f32 %v507_v43, %v347_v10  ;;  %v514_v52 = vadd.f32 %v513_v3, %v348_v45 }
  0xf0   :  { %v423_v58 = vrot.slane %v333_v37, 4  ;;  %v429_v27 = vrot.slane %v334_v32, 4  ;;  %v349_v54 = vmul.f32 %v912_v59, %v289_v16  ;;  %v350_v11 = vmul.f32 %v912_v59, %v290_v4  ;;  %v1485_v22 = vpop.eup %915 }
  0xf1   :  { %v413_v31 = vrot.slane %v1469_v34, 2  ;;  %v419_v61 = vrot.slane %v1471_v57, 2  ;;  %v498_v2 = vadd.f32 %v497_v21, %v496_v63  ;;  %v504_v8 = vadd.f32 %v503_v13, %v502_v41 }
  0xf2   :  { %v519_v51 = vrot.slane %v349_v54, 4  ;;  %v525_v6 = vrot.slane %v350_v11, 4  ;;  %v509_v7 = vrot.slane %v508_v5, 2  ;;  %v515_v9 = vrot.slane %v514_v52, 2 }
  0xf3   :  { %v335_v29 = vmul.f32 %v914_v23, %v275_v19  ;;  %v336_v30 = vmul.f32 %v914_v23, %v276_v42  ;;  %v499_v55 = vrot.slane %v498_v2, 1  ;;  %v505_v16 = vrot.slane %v504_v8, 1 }
  0xf4   :  { %v510_v4 = vadd.f32 %v509_v7, %v508_v5  ;;  %v516_v60 = vadd.f32 %v515_v9, %v514_v52  ;;  %v520_v49 = vadd.f32 %v519_v51, %v349_v54  ;;  %v526_v50 = vadd.f32 %v525_v6, %v350_v11 }
  0xf5   :  { %v424_v10 = vadd.f32 %v423_v58, %v333_v37  ;;  %v430_v24 = vadd.f32 %v429_v27, %v334_v32  ;;  %v487_v18 = vrot.slane %v486_v1, 1  ;;  %v493_v45 = vrot.slane %v492_v53, 1 }
  0xf6   :  { %v511_v63 = vrot.slane %v510_v4, 1  ;;  %v517_v41 = vrot.slane %v516_v60, 1  ;;  %v521_v62 = vrot.slane %v520_v49, 2  ;;  %v527_v35 = vrot.slane %v526_v50, 2 }
  0xf7   :  { %v500_v19 = vadd.f32 %v499_v55, %v498_v2  ;;  %v506_v17 = vadd.f32 %v505_v16, %v504_v8  ;;  %v488_v36 = vadd.f32 %v487_v18, %v486_v1  ;;  %v494_v14 = vadd.f32 %v493_v45, %v492_v53  ;;  %v1608_v45 = vld [vmem:[#allocation9_spill] sm:$0xff] }
  0xf8   :  { %v435_v42 = vrot.slane %v335_v29, 4  ;;  %v441_v38 = vrot.slane %v336_v30, 4  ;;  %v522_v33 = vadd.f32 %v521_v62, %v520_v49  ;;  %v528_v59 = vadd.f32 %v527_v35, %v526_v50 }
  0xf9   :  { %v512_v43 = vadd.f32 %v511_v63, %v510_v4  ;;  %v518_v3 = vadd.f32 %v517_v41, %v516_v60  ;;  %v403_v37 = vrot.slane %v1473_v26, 1  ;;  %v409_v32 = vrot.slane %v1475_v44, 1 }
  0xfa   :  { %v523_v21 = vrot.slane %v522_v33, 1  ;;  %v529_v13 = vrot.slane %v528_v59, 1  ;;  %v612_v5 = vsel %vm593_vm4, %v488_v36, %v1428_v46  ;;  %v618_v52 = vsel %vm593_vm4, %v494_v14, %v1431_v47 }
  0xfb   :  { %v613_v1 = vsel %vm595_vm5, %v500_v19, %v612_v5  ;;  %v619_v53 = vsel %vm595_vm5, %v506_v17, %v618_v52  ;;  %v414_v23 = vadd.f32 %v413_v31, %v1469_v34  ;;  %v420_v58 = vadd.f32 %v419_v61, %v1471_v57  ;;  %v1610_v19 = vld [vmem:[#allocation11_spill] sm:$0xff] }
  0xfc   :  { %v524_v27 = vadd.f32 %v523_v21, %v522_v33  ;;  %v530_v54 = vadd.f32 %v529_v13, %v528_v59  ;;  %v425_v11 = vrot.slane %v424_v10, 2  ;;  %v431_v2 = vrot.slane %v430_v24, 2 }
  0xfd   :  { %v614_v8 = vsel %vm597_vm6, %v512_v43, %v613_v1  ;;  %v620_v51 = vsel %vm597_vm6, %v518_v3, %v619_v53  ;;  %v436_v46 = vadd.f32 %v435_v42, %v335_v29  ;;  %v442_v6 = vadd.f32 %v441_v38, %v336_v30 }
  0xfe   :  { %v415_v47 = vrot.slane %v414_v23, 1  ;;  %v421_v7 = vrot.slane %v420_v58, 1  ;;  %v426_v9 = vadd.f32 %v425_v11, %v424_v10  ;;  %v432_v55 = vadd.f32 %v431_v2, %v430_v24 }
  0xff   :  { %v615_v16 = vsel %vm599_vm7, %v524_v27, %v614_v8  ;;  %v621_v34 = vsel %vm599_vm7, %v530_v54, %v620_v51  ;;  %v603_v57 = vsel %vm589_vm2, %v1370_v15, %v1362_v56  ;;  %917 = vrcp.f32 %v1449_v12  ;;  %v1607_v12 = vld [vmem:[#allocation8_spill] sm:$0xff] }
 0x100   :  { %v427_v31 = vrot.slane %v426_v9, 1  ;;  %v433_v61 = vrot.slane %v432_v55, 1  ;;  %v437_v4 = vrot.slane %v436_v46, 2  ;;  %v443_v29 = vrot.slane %v442_v6, 2 }
 0x101   :  { %v404_v30 = vadd.f32 %v403_v37, %v1473_v26  ;;  %v410_v60 = vadd.f32 %v409_v32, %v1475_v44  ;;  %v592_v49 = vsel %vm591_vm3, %v1372_v20, %v1440_v40  ;;  %v604_v50 = vsel %vm591_vm3, %v1374_v39, %v603_v57  ;;  %v1609_v39 = vld [vmem:[#allocation10_spill] sm:$0xff] }
 0x102   :  { %v416_v10 = vadd.f32 %v415_v47, %v414_v23  ;;  %v422_v24 = vadd.f32 %v421_v7, %v420_v58  ;;  %v438_v56 = vadd.f32 %v437_v4, %v436_v46  ;;  %v444_v15 = vadd.f32 %v443_v29, %v442_v6 }
 0x103   :  { %v628_v18 = vmul.f32 %v615_v16, %v1607_v12  ;;  %v629_v63 = vmul.f32 %v621_v34, %v1608_v45  ;;  %v428_v41 = vadd.f32 %v427_v31, %v426_v9  ;;  %v434_v62 = vadd.f32 %v433_v61, %v432_v55 }
 0x104   :  { %v439_v26 = vrot.slane %v438_v56, 1  ;;  %v445_v35 = vrot.slane %v444_v15, 1  ;;  %v594_v44 = vsel %vm593_vm4, %v1433_v28, %v592_v49  ;;  %v605_v20 = vsel %vm593_vm4, %v1435_v48, %v604_v50 }
 0x105   :  { %v644_v40 = vmul.f32 %v1609_v39, %v1410_v25  ;;  %v645_v17 = vmul.f32 %v1610_v19, %v1410_v25  ;;  %v596_v36 = vsel %vm595_vm5, %v404_v30, %v594_v44  ;;  %v606_v14 = vsel %vm595_vm5, %v410_v60, %v605_v20 }
 0x106   :  { %v440_v42 = vadd.f32 %v439_v26, %v438_v56  ;;  %v446_v38 = vadd.f32 %v445_v35, %v444_v15  ;;  %v598_v33 = vsel %vm597_vm6, %v416_v10, %v596_v36  ;;  %v607_v59 = vsel %vm597_vm6, %v422_v24, %v606_v14 }
 0x107   :  { %v648_v28 = vadd.f32 %v644_v40, %v628_v18  ;;  %v649_v43 = vadd.f32 %v645_v17, %v629_v63  ;;  %v600_v48 = vsel %vm599_vm7, %v428_v41, %v598_v33  ;;  %v608_v3 = vsel %vm599_vm7, %v434_v62, %v607_v59 }
 0x108   :  { %v602_v37 = vsel %vm601_vm8, %v440_v42, %v600_v48  ;;  %v609_v25 = vsel %vm601_vm8, %v446_v38, %v608_v3  ;;  %v642_v5 = vmul.f32 %v1609_v39, %v1425_v0  ;;  %v643_v52 = vmul.f32 %v1610_v19, %v1425_v0 }
 0x109   :  { %v918_v32 = vpop.eup %917  ;;  %v626_v21 = vmul.f32 %v602_v37, %v1607_v12  ;;  %v627_v13 = vmul.f32 %v609_v25, %v1608_v45  ;;  %v652_v1 = vmul.f32 %v1485_v22, %v648_v28  ;;  %v653_v58 = vmul.f32 %v1485_v22, %v649_v43 }
 0x10b   :  { %v646_v53 = vadd.f32 %v642_v5, %v626_v21  ;;  %v647_v23 = vadd.f32 %v643_v52, %v627_v13 }
 0x10d   :  { %v650_v27 = vmul.f32 %v918_v32, %v646_v53  ;;  %v651_v54 = vmul.f32 %v918_v32, %v647_v23 }
 0x10f   :  { %v655_v11 = vpack.c.bf16 %v653_v58, %v651_v54  ;;  %v654_v2 = vpack.c.bf16 %v652_v1, %v650_v27 }
 0x111   :  { %816 = vmatprep.mubr.bf16.mxu0 %v655_v11 }
 0x112   :  { %817 = vmatmul.mubr.bf16.vlgmr.msra.gmra.mrb[0].mxu0 %v654_v2 }
 0x1e5   :  { %v863_v8 = vpop.f32.mrb[0].mxu0 }
 0x1e6   :  { %v864_v51 = vpop.f32.mrb[1].mxu0 }
 0x1e7   :  { %v865_v46 = vadd.f32 %v864_v51, %v863_v8  ;;  %v866_v6 = vpop.f32.mrb[2].mxu0 }
 0x1e8   :  { %v867_v47 = vpop.f32.mrb[3].mxu0 }
 0x1e9   :  { %825 = vst [vmem:[%s1555_s5] sm:$0xff] %v865_v46  ;;  %v868_v0 = vadd.f32 %v867_v47, %v866_v6 }
 0x1eb   :  { %826 = vst [vmem:[%s1555_s5 + $0x8] sm:$0x7f] %v868_v0 }

</bundles_post_ra>
